<compile_context>
chip_gen: v6e
topology: v6e:2x2x1
jax: 0.10.0
libtpu: 0.0.40
codegen_flags: <defaults>
</compile_context>

<pallas_src>
import functools

import jax
import jax.numpy as jnp
from jax.experimental import pallas as pl
from jax.experimental.pallas import tpu as pltpu

EPS = 1e-5        # PyTorch BatchNorm default eps
LANE = 128        # pad every feature / contraction dim to the TPU lane width

_VMEM = pl.BlockSpec(memory_space=pltpu.MemorySpace.VMEM)


# ----------------------------------------------------------------------------
# Fused BYOL kernel
# ----------------------------------------------------------------------------
def _byol_kernel(cols_ref, wconv_ref, gconv_ref, beconv_ref, pool_ref,
                 w1s_ref, b1s_ref, g1s_ref, be1s_ref, w2s_ref, b2s_ref,
                 proj_ref, pred_ref, *, inv_count):
  """Encoder (conv3x3 + BN2d + ReLU + GAP) -> projection MLP -> prediction MLP.

  cols_ref  : [R, K_PAD]            bf16  im2col slab (valid positions only)
  wconv_ref : [K_PAD, F_PAD]        bf16  conv weights (wide-K, lane-dense)
  gconv/beconv : [1, F_PAD]         f32   BN2d gamma, beta
  pool_ref  : [n_chunks, 16, chunk] bf16  per-chunk average-pool slabs
  w1s/w2s   : [2, P, P]             bf16  stacked (proj, pred) weights
  b1s/g1s/be1s/b2s : [2, 1, P]      f32   stacked (proj, pred) params
  proj_ref, pred_ref : [N, P]       f32   lane-dense outputs
  """
  f_pad = wconv_ref.shape[-1]
  n_chunks, n_pool, chunk = pool_ref.shape
  n = proj_ref.shape[0]

  wconv = wconv_ref[...]                                     # [K_PAD, F_PAD] bf16

  def conv_chunk(i):
    r0 = pl.multiple_of(i * chunk, chunk)
    # Single wide-K (K=9*C_in, padded) matmul per row chunk.
    return jnp.dot(cols_ref[pl.ds(r0, chunk), :], wconv,
                   preferred_element_type=jnp.float32)       # [chunk, F_PAD] f32

  # ---- Phase 1: conv + BN2d sum / sum-of-squares accumulation ---------------
  def phase1(i, carry):
    s1, s2 = carry
    hc = conv_chunk(i)
    return (s1 + jnp.sum(hc, axis=0, keepdims=True),
            s2 + jnp.sum(hc * hc, axis=0, keepdims=True))

  zeros = jnp.zeros((1, f_pad), jnp.float32)
  s1, s2 = jax.lax.fori_loop(0, n_chunks, phase1, (zeros, zeros), unroll=True)

  mean = s1 * inv_count                                      # batch statistics
  var = jnp.maximum(s2 * inv_count - mean * mean, 0.0)       # biased variance
  scale = gconv_ref[...] * jax.lax.rsqrt(var + EPS)          # folded BN affine
  shift = beconv_ref[...] - mean * scale
  # NOTE: conv bias is omitted on purpose -- batch-stat BN cancels it exactly.

  # ---- Phase 2: normalize + ReLU (-> bf16) + pooled-matmul accumulation ------
  def phase2(i, z):
    hc = conv_chunk(i)                                       # recompute: MXU is idle
    yc = jnp.maximum(hc * scale + shift, 0.0).astype(jnp.bfloat16)
    return z + jnp.dot(pool_ref[i], yc,                      # [16, F_PAD] f32
                       preferred_element_type=jnp.float32)

  z = jax.lax.fori_loop(0, n_chunks, phase2,
                        jnp.zeros((n_pool, f_pad), jnp.float32), unroll=True)
  z = z[:n]                                                  # drop padded pool rows

  # ---- Projection MLP (head 0) then prediction MLP (head 1), fused ----------
  inv_n = 1.0 / float(n)
  for head in range(2):
    h1 = jnp.dot(z.astype(jnp.bfloat16), w1s_ref[head],
                 preferred_element_type=jnp.float32) + b1s_ref[head]   # [N, P]
    mu = jnp.sum(h1, axis=0, keepdims=True) * inv_n          # BatchNorm1d, batch stats
    ms = jnp.sum(h1 * h1, axis=0, keepdims=True) * inv_n
    v = jnp.maximum(ms - mu * mu, 0.0)
    sc = g1s_ref[head] * jax.lax.rsqrt(v + EPS)              # folded BN affine
    sh = be1s_ref[head] - mu * sc
    a = jnp.maximum(h1 * sc + sh, 0.0).astype(jnp.bfloat16)
    z = jnp.dot(a, w2s_ref[head],
                preferred_element_type=jnp.float32) + b2s_ref[head]    # [N, P]
    if head == 0:
      proj_ref[...] = z                                      # project
  pred_ref[...] = z                                          # predict


# ----------------------------------------------------------------------------
# Host-side glue
# ----------------------------------------------------------------------------
def _im2col_3x3_bf16(x_nhwc):
  """[N,H,W,C] f32 -> [N*H*W, 9*C] bf16 patches (conv padding=1)."""
  n, h, w, c = x_nhwc.shape
  xb = x_nhwc.astype(jnp.bfloat16)                           # cast BEFORE the pads
  xp = jnp.pad(xb, ((0, 0), (1, 1), (1, 1), (0, 0)))
  cols = [xp[:, dy:dy + h, dx:dx + w, :] for dy in range(3) for dx in range(3)]
  return jnp.concatenate(cols, axis=-1).reshape(n * h * w, 9 * c)


def _pool_matrix(n, hw, n_chunks, chunk, n_pool):
  """Average-pool slabs [n_chunks, n_pool, chunk]; rows >= n are zero."""
  r = n * hw
  sample = jnp.arange(r, dtype=jnp.int32) // hw
  onehot = sample[None, :] == jnp.arange(n_pool, dtype=jnp.int32)[:, None]
  pool = onehot.astype(jnp.float32) / float(hw)              # [n_pool, R]; 1/256 exact
  pool = pool.reshape(n_pool, n_chunks, chunk).transpose(1, 0, 2)
  return pool.astype(jnp.bfloat16)


def byol_forward(packed, x_nchw, net="online"):
  """BYOL.forward: returns `predict` for net='online', `project` for net='target'."""
  x = jnp.transpose(x_nchw, (0, 2, 3, 1))                    # NCHW -> NHWC
  n, h, w, c = x.shape
  r = n * h * w
  chunk = 128 if r % 128 == 0 else r
  n_chunks = r // chunk
  n_pool = 16                                                # one bf16 tile sublane group

  cols = _im2col_3x3_bf16(x)                                 # [r, 9c] bf16
  k_pad = packed["wconv"].shape[0]
  cols = jnp.pad(cols, ((0, 0), (0, k_pad - cols.shape[1]))) # lane-dense K
  pool = _pool_matrix(n, h * w, n_chunks, chunk, n_pool)

  p_dim = packed["w2s"].shape[-1]                            # padded feature width (128)
  kernel = functools.partial(_byol_kernel, inv_count=1.0 / float(r))
  proj_pad, pred_pad = pl.pallas_call(
      kernel,
      out_shape=(jax.ShapeDtypeStruct((n, p_dim), jnp.float32),
                 jax.ShapeDtypeStruct((n, p_dim), jnp.float32)),
      in_specs=[_VMEM] * 11,
      out_specs=(_VMEM, _VMEM),
      compiler_params=pltpu.CompilerParams(vmem_limit_bytes=32 * 1024 * 1024),
  )(cols, packed["wconv"], packed["gconv"], packed["beconv"], pool,
    packed["w1s"], packed["b1s"], packed["g1s"], packed["be1s"],
    packed["w2s"], packed["b2s"])

  out_dim = packed["out_dim"]
  if net == "target":
    return proj_pad[:, :out_dim]
  return pred_pad[:, :out_dim]


# ----------------------------------------------------------------------------
# Parameter init (logical shapes) and packing into the kernel layout
# ----------------------------------------------------------------------------
def _uniform(key, shape, fan_in):
  bound = 1.0 / jnp.sqrt(jnp.asarray(fan_in, jnp.float32))
  return jax.random.uniform(key, shape, jnp.float32, -bound, bound)


def init_params(key, c_in, feat_dim, hid_dim, out_dim):
  ks = jax.random.split(key, 6)
  enc = dict(
      wconv=_uniform(ks[0], (9 * c_in, feat_dim), 9 * c_in),
      bconv=_uniform(ks[1], (1, feat_dim), 9 * c_in),
      # Non-trivial gamma/beta so the correctness check exercises the BN affine.
      gamma=1.0 + 0.1 * jax.random.normal(ks[2], (1, feat_dim), jnp.float32),
      beta=0.1 * jax.random.normal(ks[3], (1, feat_dim), jnp.float32),
  )

  def mlp(k, in_dim, hid, out):
    k1, k2, k3, k4, k5, k6 = jax.random.split(k, 6)
    return dict(
        w1=_uniform(k1, (in_dim, hid), in_dim),
        b1=_uniform(k2, (1, hid), in_dim),
        gamma=1.0 + 0.1 * jax.random.normal(k5, (1, hid), jnp.float32),
        beta=0.1 * jax.random.normal(k6, (1, hid), jnp.float32),
        w2=_uniform(k3, (hid, out), hid),
        b2=_uniform(k4, (1, out), hid),
    )

  proj = mlp(ks[4], feat_dim, hid_dim, out_dim)   # MLP(backbone.fc.in_features, hid, out)
  pred = mlp(ks[5], out_dim, hid_dim, out_dim)    # MLP(out_dim, hid, out)
  return dict(enc=enc, proj=proj, pred=pred)


def _pad2(a, rows, cols):
  return jnp.pad(a, ((0, rows - a.shape[0]), (0, cols - a.shape[1])))


def pack_params(params):
  """One-time layout transform: pad feature dims to 128, weights -> bf16."""
  enc = params["enc"]
  k9c, feat = enc["wconv"].shape
  hid = params["proj"]["w1"].shape[1]
  out = params["proj"]["w2"].shape[1]
  p = -(-max(feat, hid, out) // LANE) * LANE      # common padded width (128)
  k_pad = -(-k9c // LANE) * LANE                  # conv contraction dim, lane-dense

  packed = dict(
      # NOTE: enc["bconv"] is intentionally NOT packed -- it cancels exactly under
      # training-mode batch-stat BatchNorm (the reference still applies it).
      wconv=_pad2(enc["wconv"], k_pad, p).astype(jnp.bfloat16),
      gconv=_pad2(enc["gamma"], 1, p),
      beconv=_pad2(enc["beta"], 1, p),
      out_dim=out,
  )

  def head(hp):
    return (_pad2(hp["w1"], p, p).astype(jnp.bfloat16),
            _pad2(hp["b1"], 1, p),
            _pad2(hp["gamma"], 1, p),
            _pad2(hp["beta"], 1, p),
            _pad2(hp["w2"], p, p).astype(jnp.bfloat16),
            _pad2(hp["b2"], 1, p))

  ph, qh = head(params["proj"]), head(params["pred"])
  (packed["w1s"], packed["b1s"], packed["g1s"],
   packed["be1s"], packed["w2s"], packed["b2s"]) = tuple(
       jnp.stack([a, b]) for a, b in zip(ph, qh))
  return packed


# ----------------------------------------------------------------------------
# Pure-JAX reference (mirrors the kernel's bf16 matmul-operand rounding)
# ----------------------------------------------------------------------------
_HIGH = jax.lax.Precision.HIGHEST


def _b16(a):
  return a.astype(jnp.bfloat16).astype(jnp.float32)


def im2col_3x3(x_nhwc):
  n, h, w, c = x_nhwc.shape
  xp = jnp.pad(x_nhwc, ((0, 0), (1, 1), (1, 1), (0, 0)))
  cols = [xp[:, dy:dy + h, dx:dx + w, :] for dy in range(3) for dx in range(3)]
  return jnp.concatenate(cols, axis=-1).reshape(n * h * w, 9 * c)


def _bn_relu_ref(hm, gamma, beta):
  mean = jnp.mean(hm, axis=0, keepdims=True)
  var = jnp.mean((hm - mean) ** 2, axis=0, keepdims=True)   # biased, batch stats
  return jnp.maximum(gamma * (hm - mean) * jax.lax.rsqrt(var + EPS) + beta, 0.0)


def byol_forward_ref(params, x_nchw, net="online"):
  x = jnp.transpose(x_nchw, (0, 2, 3, 1)).astype(jnp.float32)
  n, h, w, _ = x.shape
  enc = params["enc"]
  patches = im2col_3x3(_b16(x))
  # Reference keeps the conv bias; the kernel drops it (cancelled by BN mean).
  hmap = jnp.dot(patches, _b16(enc["wconv"]), precision=_HIGH) + enc["bconv"]
  y = _bn_relu_ref(hmap, enc["gamma"], enc["beta"])
  emb = jnp.mean(_b16(y).reshape(n, h * w, -1), axis=1)

  def mlp(p, zin):
    h1 = jnp.dot(_b16(zin), _b16(p["w1"]), precision=_HIGH) + p["b1"]
    a = _bn_relu_ref(h1, p["gamma"], p["beta"])
    return jnp.dot(_b16(a), _b16(p["w2"]), precision=_HIGH) + p["b2"]

  proj = mlp(params["proj"], emb)
  if net == "target":
    return proj
  return mlp(params["pred"], proj)


# ----------------------------------------------------------------------------
if __name__ == "__main__":
  N, C_IN, H, W = 2, 4, 16, 16          # input images, NCHW like PyTorch
  FEAT_DIM = 32                          # backbone.fc.in_features
  HID_DIM = 32                           # hid_dim
  OUT_DIM = 16                           # out_dim

  root = jax.random.PRNGKey(0)
  k_params, k_x = jax.random.split(root)
  params = init_params(k_params, C_IN, FEAT_DIM, HID_DIM, OUT_DIM)
  packed = pack_params(params)
  x = jax.random.normal(k_x, (N, C_IN, H, W), jnp.float32)

  out_online = jax.block_until_ready(byol_forward(packed, x, net="online"))
  out_target = jax.block_until_ready(byol_forward(packed, x, net="target"))

  ref_online = byol_forward_ref(params, x, net="online")
  ref_target = byol_forward_ref(params, x, net="target")

  assert out_online.shape == (N, OUT_DIM)
  assert out_target.shape == (N, OUT_DIM)
  # Tolerance covers accumulation-order / MXU-pass differences and the (exactly
  # cancelling) conv-bias drop; bf16 operand rounding itself is mirrored by the
  # reference, so real bugs show up >> 1e-2.
  assert jnp.allclose(out_online, ref_online, atol=1e-2, rtol=1e-2), (
      float(jnp.max(jnp.abs(out_online - ref_online))))
  assert jnp.allclose(out_target, ref_target, atol=1e-2, rtol=1e-2), (
      float(jnp.max(jnp.abs(out_target - ref_target))))

  print("KERNEL_OK")
</pallas_src>

<mosaic_0001>
module attributes {stable_mosaic.version = 11 : i64} {
  func.func @_byol_kernel(%arg0: memref<512x128xbf16, #tpu.memory_space<vmem>>, %arg1: memref<128x128xbf16, #tpu.memory_space<vmem>>, %arg2: memref<1x128xf32, #tpu.memory_space<vmem>>, %arg3: memref<1x128xf32, #tpu.memory_space<vmem>>, %arg4: memref<4x16x128xbf16, #tpu.memory_space<vmem>>, %arg5: memref<2x128x128xbf16, #tpu.memory_space<vmem>>, %arg6: memref<2x1x128xf32, #tpu.memory_space<vmem>>, %arg7: memref<2x1x128xf32, #tpu.memory_space<vmem>>, %arg8: memref<2x1x128xf32, #tpu.memory_space<vmem>>, %arg9: memref<2x128x128xbf16, #tpu.memory_space<vmem>>, %arg10: memref<2x1x128xf32, #tpu.memory_space<vmem>>, %arg11: memref<2x128xf32, #tpu.memory_space<vmem>>, %arg12: memref<2x128xf32, #tpu.memory_space<vmem>>) attributes {dimension_semantics = [], scalar_prefetch = 0 : i64, scratch_operands = 0 : i64, tpu.core_type = #tpu.core_type<tc>} {
    %c0 = arith.constant 0 : index
    %c0_0 = arith.constant 0 : index
    %0 = vector.load %arg1[%c0, %c0_0] : memref<128x128xbf16, #tpu.memory_space<vmem>>, vector<128x128xbf16>
    %cst = arith.constant 0.000000e+00 : f32
    %1 = vector.broadcast %cst : f32 to vector<1x128xf32>
    %c0_i32 = arith.constant 0 : i32
    %c128_i32 = arith.constant 128 : i32
    %2 = arith.muli %c0_i32, %c128_i32 : i32
    %3 = tpu.assume_multiple %2, 128 : i32
    %4 = arith.index_cast %3 : i32 to index
    %c0_1 = arith.constant 0 : index
    %5 = vector.load %arg0[%4, %c0_1] : memref<512x128xbf16, #tpu.memory_space<vmem>>, vector<128x128xbf16>
    %cst_2 = arith.constant dense<0.000000e+00> : vector<128x128xf32>
    %6 = tpu.matmul %5, %0, %cst_2 {dimension_numbers = #tpu.dot_dimension_numbers<[1], [0], [0], [1], [0, 0, 1, 1], [], []>} : vector<128x128xbf16>, vector<128x128xbf16>, vector<128x128xf32> -> vector<128x128xf32>
    %cst_3 = arith.constant dense<0.000000e+00> : vector<128xf32>
    %7 = vector.multi_reduction <add>, %6, %cst_3 [0] : vector<128x128xf32> to vector<128xf32>
    %8 = vector.shape_cast %7 : vector<128xf32> to vector<1x128xf32>
    %9 = arith.addf %1, %8 : vector<1x128xf32>
    %10 = arith.mulf %6, %6 : vector<128x128xf32>
    %cst_4 = arith.constant dense<0.000000e+00> : vector<128xf32>
    %11 = vector.multi_reduction <add>, %10, %cst_4 [0] : vector<128x128xf32> to vector<128xf32>
    %12 = vector.shape_cast %11 : vector<128xf32> to vector<1x128xf32>
    %13 = arith.addf %1, %12 : vector<1x128xf32>
    %c1_i32 = arith.constant 1 : i32
    %c128_i32_5 = arith.constant 128 : i32
    %14 = arith.muli %c1_i32, %c128_i32_5 : i32
    %15 = tpu.assume_multiple %14, 128 : i32
    %16 = arith.index_cast %15 : i32 to index
    %c0_6 = arith.constant 0 : index
    %17 = vector.load %arg0[%16, %c0_6] : memref<512x128xbf16, #tpu.memory_space<vmem>>, vector<128x128xbf16>
    %cst_7 = arith.constant dense<0.000000e+00> : vector<128x128xf32>
    %18 = tpu.matmul %17, %0, %cst_7 {dimension_numbers = #tpu.dot_dimension_numbers<[1], [0], [0], [1], [0, 0, 1, 1], [], []>} : vector<128x128xbf16>, vector<128x128xbf16>, vector<128x128xf32> -> vector<128x128xf32>
    %cst_8 = arith.constant dense<0.000000e+00> : vector<128xf32>
    %19 = vector.multi_reduction <add>, %18, %cst_8 [0] : vector<128x128xf32> to vector<128xf32>
    %20 = vector.shape_cast %19 : vector<128xf32> to vector<1x128xf32>
    %21 = arith.addf %9, %20 : vector<1x128xf32>
    %22 = arith.mulf %18, %18 : vector<128x128xf32>
    %cst_9 = arith.constant dense<0.000000e+00> : vector<128xf32>
    %23 = vector.multi_reduction <add>, %22, %cst_9 [0] : vector<128x128xf32> to vector<128xf32>
    %24 = vector.shape_cast %23 : vector<128xf32> to vector<1x128xf32>
    %25 = arith.addf %13, %24 : vector<1x128xf32>
    %c2_i32 = arith.constant 2 : i32
    %c128_i32_10 = arith.constant 128 : i32
    %26 = arith.muli %c2_i32, %c128_i32_10 : i32
    %27 = tpu.assume_multiple %26, 128 : i32
    %28 = arith.index_cast %27 : i32 to index
    %c0_11 = arith.constant 0 : index
    %29 = vector.load %arg0[%28, %c0_11] : memref<512x128xbf16, #tpu.memory_space<vmem>>, vector<128x128xbf16>
    %cst_12 = arith.constant dense<0.000000e+00> : vector<128x128xf32>
    %30 = tpu.matmul %29, %0, %cst_12 {dimension_numbers = #tpu.dot_dimension_numbers<[1], [0], [0], [1], [0, 0, 1, 1], [], []>} : vector<128x128xbf16>, vector<128x128xbf16>, vector<128x128xf32> -> vector<128x128xf32>
    %cst_13 = arith.constant dense<0.000000e+00> : vector<128xf32>
    %31 = vector.multi_reduction <add>, %30, %cst_13 [0] : vector<128x128xf32> to vector<128xf32>
    %32 = vector.shape_cast %31 : vector<128xf32> to vector<1x128xf32>
    %33 = arith.addf %21, %32 : vector<1x128xf32>
    %34 = arith.mulf %30, %30 : vector<128x128xf32>
    %cst_14 = arith.constant dense<0.000000e+00> : vector<128xf32>
    %35 = vector.multi_reduction <add>, %34, %cst_14 [0] : vector<128x128xf32> to vector<128xf32>
    %36 = vector.shape_cast %35 : vector<128xf32> to vector<1x128xf32>
    %37 = arith.addf %25, %36 : vector<1x128xf32>
    %c3_i32 = arith.constant 3 : i32
    %c128_i32_15 = arith.constant 128 : i32
    %38 = arith.muli %c3_i32, %c128_i32_15 : i32
    %39 = tpu.assume_multiple %38, 128 : i32
    %40 = arith.index_cast %39 : i32 to index
    %c0_16 = arith.constant 0 : index
    %41 = vector.load %arg0[%40, %c0_16] : memref<512x128xbf16, #tpu.memory_space<vmem>>, vector<128x128xbf16>
    %cst_17 = arith.constant dense<0.000000e+00> : vector<128x128xf32>
    %42 = tpu.matmul %41, %0, %cst_17 {dimension_numbers = #tpu.dot_dimension_numbers<[1], [0], [0], [1], [0, 0, 1, 1], [], []>} : vector<128x128xbf16>, vector<128x128xbf16>, vector<128x128xf32> -> vector<128x128xf32>
    %cst_18 = arith.constant dense<0.000000e+00> : vector<128xf32>
    %43 = vector.multi_reduction <add>, %42, %cst_18 [0] : vector<128x128xf32> to vector<128xf32>
    %44 = vector.shape_cast %43 : vector<128xf32> to vector<1x128xf32>
    %45 = arith.addf %33, %44 : vector<1x128xf32>
    %46 = arith.mulf %42, %42 : vector<128x128xf32>
    %cst_19 = arith.constant dense<0.000000e+00> : vector<128xf32>
    %47 = vector.multi_reduction <add>, %46, %cst_19 [0] : vector<128x128xf32> to vector<128xf32>
    %48 = vector.shape_cast %47 : vector<128xf32> to vector<1x128xf32>
    %49 = arith.addf %37, %48 : vector<1x128xf32>
    %c4_i32 = arith.constant 4 : i32
    %cst_20 = arith.constant 0.001953125 : f32
    %50 = vector.broadcast %cst_20 : f32 to vector<1x128xf32>
    %51 = arith.mulf %45, %50 : vector<1x128xf32>
    %cst_21 = arith.constant 0.001953125 : f32
    %52 = vector.broadcast %cst_21 : f32 to vector<1x128xf32>
    %53 = arith.mulf %49, %52 : vector<1x128xf32>
    %54 = arith.mulf %51, %51 : vector<1x128xf32>
    %55 = arith.subf %53, %54 : vector<1x128xf32>
    %cst_22 = arith.constant 0.000000e+00 : f32
    %56 = vector.broadcast %cst_22 : f32 to vector<1x128xf32>
    %57 = arith.maximumf %55, %56 : vector<1x128xf32>
    %c0_23 = arith.constant 0 : index
    %c0_24 = arith.constant 0 : index
    %58 = vector.load %arg2[%c0_23, %c0_24] : memref<1x128xf32, #tpu.memory_space<vmem>>, vector<1x128xf32>
    %cst_25 = arith.constant 9.99999974E-6 : f32
    %59 = vector.broadcast %cst_25 : f32 to vector<1x128xf32>
    %60 = arith.addf %57, %59 : vector<1x128xf32>
    %61 = math.rsqrt %60 : vector<1x128xf32>
    %62 = arith.mulf %58, %61 : vector<1x128xf32>
    %c0_26 = arith.constant 0 : index
    %c0_27 = arith.constant 0 : index
    %63 = vector.load %arg3[%c0_26, %c0_27] : memref<1x128xf32, #tpu.memory_space<vmem>>, vector<1x128xf32>
    %64 = arith.mulf %51, %62 : vector<1x128xf32>
    %65 = arith.subf %63, %64 : vector<1x128xf32>
    %cst_28 = arith.constant 0.000000e+00 : f32
    %66 = vector.broadcast %cst_28 : f32 to vector<16x128xf32>
    %c0_i32_29 = arith.constant 0 : i32
    %c128_i32_30 = arith.constant 128 : i32
    %67 = arith.muli %c0_i32_29, %c128_i32_30 : i32
    %68 = tpu.assume_multiple %67, 128 : i32
    %69 = arith.index_cast %68 : i32 to index
    %c0_31 = arith.constant 0 : index
    %70 = vector.load %arg0[%69, %c0_31] : memref<512x128xbf16, #tpu.memory_space<vmem>>, vector<128x128xbf16>
    %cst_32 = arith.constant dense<0.000000e+00> : vector<128x128xf32>
    %71 = tpu.matmul %70, %0, %cst_32 {dimension_numbers = #tpu.dot_dimension_numbers<[1], [0], [0], [1], [0, 0, 1, 1], [], []>} : vector<128x128xbf16>, vector<128x128xbf16>, vector<128x128xf32> -> vector<128x128xf32>
    %72 = vector.broadcast %62 : vector<1x128xf32> to vector<128x128xf32>
    %73 = arith.mulf %71, %72 : vector<128x128xf32>
    %74 = vector.broadcast %65 : vector<1x128xf32> to vector<128x128xf32>
    %75 = arith.addf %73, %74 : vector<128x128xf32>
    %cst_33 = arith.constant 0.000000e+00 : f32
    %76 = vector.broadcast %cst_33 : f32 to vector<128x128xf32>
    %77 = arith.maximumf %75, %76 : vector<128x128xf32>
    %78 = arith.truncf %77 : vector<128x128xf32> to vector<128x128xbf16>
    %79 = arith.index_cast %c0_i32_29 : i32 to index
    %c0_34 = arith.constant 0 : index
    %c0_35 = arith.constant 0 : index
    %80 = vector.load %arg4[%79, %c0_34, %c0_35] : memref<4x16x128xbf16, #tpu.memory_space<vmem>>, vector<1x16x128xbf16>
    %81 = vector.shape_cast %80 : vector<1x16x128xbf16> to vector<16x128xbf16>
    %cst_36 = arith.constant dense<0.000000e+00> : vector<16x128xf32>
    %82 = tpu.matmul %81, %78, %cst_36 {dimension_numbers = #tpu.dot_dimension_numbers<[1], [0], [0], [1], [0, 0, 1, 1], [], []>} : vector<16x128xbf16>, vector<128x128xbf16>, vector<16x128xf32> -> vector<16x128xf32>
    %83 = arith.addf %66, %82 : vector<16x128xf32>
    %c1_i32_37 = arith.constant 1 : i32
    %c128_i32_38 = arith.constant 128 : i32
    %84 = arith.muli %c1_i32_37, %c128_i32_38 : i32
    %85 = tpu.assume_multiple %84, 128 : i32
    %86 = arith.index_cast %85 : i32 to index
    %c0_39 = arith.constant 0 : index
    %87 = vector.load %arg0[%86, %c0_39] : memref<512x128xbf16, #tpu.memory_space<vmem>>, vector<128x128xbf16>
    %cst_40 = arith.constant dense<0.000000e+00> : vector<128x128xf32>
    %88 = tpu.matmul %87, %0, %cst_40 {dimension_numbers = #tpu.dot_dimension_numbers<[1], [0], [0], [1], [0, 0, 1, 1], [], []>} : vector<128x128xbf16>, vector<128x128xbf16>, vector<128x128xf32> -> vector<128x128xf32>
    %89 = vector.broadcast %62 : vector<1x128xf32> to vector<128x128xf32>
    %90 = arith.mulf %88, %89 : vector<128x128xf32>
    %91 = vector.broadcast %65 : vector<1x128xf32> to vector<128x128xf32>
    %92 = arith.addf %90, %91 : vector<128x128xf32>
    %cst_41 = arith.constant 0.000000e+00 : f32
    %93 = vector.broadcast %cst_41 : f32 to vector<128x128xf32>
    %94 = arith.maximumf %92, %93 : vector<128x128xf32>
    %95 = arith.truncf %94 : vector<128x128xf32> to vector<128x128xbf16>
    %96 = arith.index_cast %c1_i32_37 : i32 to index
    %c0_42 = arith.constant 0 : index
    %c0_43 = arith.constant 0 : index
    %97 = vector.load %arg4[%96, %c0_42, %c0_43] : memref<4x16x128xbf16, #tpu.memory_space<vmem>>, vector<1x16x128xbf16>
    %98 = vector.shape_cast %97 : vector<1x16x128xbf16> to vector<16x128xbf16>
    %cst_44 = arith.constant dense<0.000000e+00> : vector<16x128xf32>
    %99 = tpu.matmul %98, %95, %cst_44 {dimension_numbers = #tpu.dot_dimension_numbers<[1], [0], [0], [1], [0, 0, 1, 1], [], []>} : vector<16x128xbf16>, vector<128x128xbf16>, vector<16x128xf32> -> vector<16x128xf32>
    %100 = arith.addf %83, %99 : vector<16x128xf32>
    %c2_i32_45 = arith.constant 2 : i32
    %c128_i32_46 = arith.constant 128 : i32
    %101 = arith.muli %c2_i32_45, %c128_i32_46 : i32
    %102 = tpu.assume_multiple %101, 128 : i32
    %103 = arith.index_cast %102 : i32 to index
    %c0_47 = arith.constant 0 : index
    %104 = vector.load %arg0[%103, %c0_47] : memref<512x128xbf16, #tpu.memory_space<vmem>>, vector<128x128xbf16>
    %cst_48 = arith.constant dense<0.000000e+00> : vector<128x128xf32>
    %105 = tpu.matmul %104, %0, %cst_48 {dimension_numbers = #tpu.dot_dimension_numbers<[1], [0], [0], [1], [0, 0, 1, 1], [], []>} : vector<128x128xbf16>, vector<128x128xbf16>, vector<128x128xf32> -> vector<128x128xf32>
    %106 = vector.broadcast %62 : vector<1x128xf32> to vector<128x128xf32>
    %107 = arith.mulf %105, %106 : vector<128x128xf32>
    %108 = vector.broadcast %65 : vector<1x128xf32> to vector<128x128xf32>
    %109 = arith.addf %107, %108 : vector<128x128xf32>
    %cst_49 = arith.constant 0.000000e+00 : f32
    %110 = vector.broadcast %cst_49 : f32 to vector<128x128xf32>
    %111 = arith.maximumf %109, %110 : vector<128x128xf32>
    %112 = arith.truncf %111 : vector<128x128xf32> to vector<128x128xbf16>
    %113 = arith.index_cast %c2_i32_45 : i32 to index
    %c0_50 = arith.constant 0 : index
    %c0_51 = arith.constant 0 : index
    %114 = vector.load %arg4[%113, %c0_50, %c0_51] : memref<4x16x128xbf16, #tpu.memory_space<vmem>>, vector<1x16x128xbf16>
    %115 = vector.shape_cast %114 : vector<1x16x128xbf16> to vector<16x128xbf16>
    %cst_52 = arith.constant dense<0.000000e+00> : vector<16x128xf32>
    %116 = tpu.matmul %115, %112, %cst_52 {dimension_numbers = #tpu.dot_dimension_numbers<[1], [0], [0], [1], [0, 0, 1, 1], [], []>} : vector<16x128xbf16>, vector<128x128xbf16>, vector<16x128xf32> -> vector<16x128xf32>
    %117 = arith.addf %100, %116 : vector<16x128xf32>
    %c3_i32_53 = arith.constant 3 : i32
    %c128_i32_54 = arith.constant 128 : i32
    %118 = arith.muli %c3_i32_53, %c128_i32_54 : i32
    %119 = tpu.assume_multiple %118, 128 : i32
    %120 = arith.index_cast %119 : i32 to index
    %c0_55 = arith.constant 0 : index
    %121 = vector.load %arg0[%120, %c0_55] : memref<512x128xbf16, #tpu.memory_space<vmem>>, vector<128x128xbf16>
    %cst_56 = arith.constant dense<0.000000e+00> : vector<128x128xf32>
    %122 = tpu.matmul %121, %0, %cst_56 {dimension_numbers = #tpu.dot_dimension_numbers<[1], [0], [0], [1], [0, 0, 1, 1], [], []>} : vector<128x128xbf16>, vector<128x128xbf16>, vector<128x128xf32> -> vector<128x128xf32>
    %123 = vector.broadcast %62 : vector<1x128xf32> to vector<128x128xf32>
    %124 = arith.mulf %122, %123 : vector<128x128xf32>
    %125 = vector.broadcast %65 : vector<1x128xf32> to vector<128x128xf32>
    %126 = arith.addf %124, %125 : vector<128x128xf32>
    %cst_57 = arith.constant 0.000000e+00 : f32
    %127 = vector.broadcast %cst_57 : f32 to vector<128x128xf32>
    %128 = arith.maximumf %126, %127 : vector<128x128xf32>
    %129 = arith.truncf %128 : vector<128x128xf32> to vector<128x128xbf16>
    %130 = arith.index_cast %c3_i32_53 : i32 to index
    %c0_58 = arith.constant 0 : index
    %c0_59 = arith.constant 0 : index
    %131 = vector.load %arg4[%130, %c0_58, %c0_59] : memref<4x16x128xbf16, #tpu.memory_space<vmem>>, vector<1x16x128xbf16>
    %132 = vector.shape_cast %131 : vector<1x16x128xbf16> to vector<16x128xbf16>
    %cst_60 = arith.constant dense<0.000000e+00> : vector<16x128xf32>
    %133 = tpu.matmul %132, %129, %cst_60 {dimension_numbers = #tpu.dot_dimension_numbers<[1], [0], [0], [1], [0, 0, 1, 1], [], []>} : vector<16x128xbf16>, vector<128x128xbf16>, vector<16x128xf32> -> vector<16x128xf32>
    %134 = arith.addf %117, %133 : vector<16x128xf32>
    %c4_i32_61 = arith.constant 4 : i32
    %135 = vector.extract_strided_slice %134 {offsets = [0, 0], sizes = [2, 128], strides = [1, 1]} : vector<16x128xf32> to vector<2x128xf32>
    %136 = arith.truncf %135 : vector<2x128xf32> to vector<2x128xbf16>
    %c0_62 = arith.constant 0 : index
    %c0_63 = arith.constant 0 : index
    %c0_64 = arith.constant 0 : index
    %137 = vector.load %arg5[%c0_62, %c0_63, %c0_64] : memref<2x128x128xbf16, #tpu.memory_space<vmem>>, vector<1x128x128xbf16>
    %138 = vector.shape_cast %137 : vector<1x128x128xbf16> to vector<128x128xbf16>
    %cst_65 = arith.constant dense<0.000000e+00> : vector<2x128xf32>
    %139 = tpu.matmul %136, %138, %cst_65 {dimension_numbers = #tpu.dot_dimension_numbers<[1], [0], [0], [1], [0, 0, 1, 1], [], []>} : vector<2x128xbf16>, vector<128x128xbf16>, vector<2x128xf32> -> vector<2x128xf32>
    %c0_66 = arith.constant 0 : index
    %c0_67 = arith.constant 0 : index
    %c0_68 = arith.constant 0 : index
    %140 = vector.load %arg6[%c0_66, %c0_67, %c0_68] : memref<2x1x128xf32, #tpu.memory_space<vmem>>, vector<1x1x128xf32>
    %141 = vector.shape_cast %140 : vector<1x1x128xf32> to vector<1x128xf32>
    %142 = vector.broadcast %141 : vector<1x128xf32> to vector<2x128xf32>
    %143 = arith.addf %139, %142 : vector<2x128xf32>
    %cst_69 = arith.constant dense<0.000000e+00> : vector<128xf32>
    %144 = vector.multi_reduction <add>, %143, %cst_69 [0] : vector<2x128xf32> to vector<128xf32>
    %145 = vector.shape_cast %144 : vector<128xf32> to vector<1x128xf32>
    %cst_70 = arith.constant 5.000000e-01 : f32
    %146 = vector.broadcast %cst_70 : f32 to vector<1x128xf32>
    %147 = arith.mulf %145, %146 : vector<1x128xf32>
    %148 = arith.mulf %143, %143 : vector<2x128xf32>
    %cst_71 = arith.constant dense<0.000000e+00> : vector<128xf32>
    %149 = vector.multi_reduction <add>, %148, %cst_71 [0] : vector<2x128xf32> to vector<128xf32>
    %150 = vector.shape_cast %149 : vector<128xf32> to vector<1x128xf32>
    %cst_72 = arith.constant 5.000000e-01 : f32
    %151 = vector.broadcast %cst_72 : f32 to vector<1x128xf32>
    %152 = arith.mulf %150, %151 : vector<1x128xf32>
    %153 = arith.mulf %147, %147 : vector<1x128xf32>
    %154 = arith.subf %152, %153 : vector<1x128xf32>
    %cst_73 = arith.constant 0.000000e+00 : f32
    %155 = vector.broadcast %cst_73 : f32 to vector<1x128xf32>
    %156 = arith.maximumf %154, %155 : vector<1x128xf32>
    %c0_74 = arith.constant 0 : index
    %c0_75 = arith.constant 0 : index
    %c0_76 = arith.constant 0 : index
    %157 = vector.load %arg7[%c0_74, %c0_75, %c0_76] : memref<2x1x128xf32, #tpu.memory_space<vmem>>, vector<1x1x128xf32>
    %158 = vector.shape_cast %157 : vector<1x1x128xf32> to vector<1x128xf32>
    %cst_77 = arith.constant 9.99999974E-6 : f32
    %159 = vector.broadcast %cst_77 : f32 to vector<1x128xf32>
    %160 = arith.addf %156, %159 : vector<1x128xf32>
    %161 = math.rsqrt %160 : vector<1x128xf32>
    %162 = arith.mulf %158, %161 : vector<1x128xf32>
    %c0_78 = arith.constant 0 : index
    %c0_79 = arith.constant 0 : index
    %c0_80 = arith.constant 0 : index
    %163 = vector.load %arg8[%c0_78, %c0_79, %c0_80] : memref<2x1x128xf32, #tpu.memory_space<vmem>>, vector<1x1x128xf32>
    %164 = vector.shape_cast %163 : vector<1x1x128xf32> to vector<1x128xf32>
    %165 = arith.mulf %147, %162 : vector<1x128xf32>
    %166 = arith.subf %164, %165 : vector<1x128xf32>
    %167 = vector.broadcast %162 : vector<1x128xf32> to vector<2x128xf32>
    %168 = arith.mulf %143, %167 : vector<2x128xf32>
    %169 = vector.broadcast %166 : vector<1x128xf32> to vector<2x128xf32>
    %170 = arith.addf %168, %169 : vector<2x128xf32>
    %cst_81 = arith.constant 0.000000e+00 : f32
    %171 = vector.broadcast %cst_81 : f32 to vector<2x128xf32>
    %172 = arith.maximumf %170, %171 : vector<2x128xf32>
    %173 = arith.truncf %172 : vector<2x128xf32> to vector<2x128xbf16>
    %c0_82 = arith.constant 0 : index
    %c0_83 = arith.constant 0 : index
    %c0_84 = arith.constant 0 : index
    %174 = vector.load %arg9[%c0_82, %c0_83, %c0_84] : memref<2x128x128xbf16, #tpu.memory_space<vmem>>, vector<1x128x128xbf16>
    %175 = vector.shape_cast %174 : vector<1x128x128xbf16> to vector<128x128xbf16>
    %cst_85 = arith.constant dense<0.000000e+00> : vector<2x128xf32>
    %176 = tpu.matmul %173, %175, %cst_85 {dimension_numbers = #tpu.dot_dimension_numbers<[1], [0], [0], [1], [0, 0, 1, 1], [], []>} : vector<2x128xbf16>, vector<128x128xbf16>, vector<2x128xf32> -> vector<2x128xf32>
    %c0_86 = arith.constant 0 : index
    %c0_87 = arith.constant 0 : index
    %c0_88 = arith.constant 0 : index
    %177 = vector.load %arg10[%c0_86, %c0_87, %c0_88] : memref<2x1x128xf32, #tpu.memory_space<vmem>>, vector<1x1x128xf32>
    %178 = vector.shape_cast %177 : vector<1x1x128xf32> to vector<1x128xf32>
    %179 = vector.broadcast %178 : vector<1x128xf32> to vector<2x128xf32>
    %180 = arith.addf %176, %179 : vector<2x128xf32>
    %c0_89 = arith.constant 0 : index
    %c0_90 = arith.constant 0 : index
    %181 = vector.load %arg11[%c0_89, %c0_90] : memref<2x128xf32, #tpu.memory_space<vmem>>, vector<2x128xf32>
    tpu.vector_store %arg11[%c0_89, %c0_90], %180 {strides = array<i32>} : memref<2x128xf32, #tpu.memory_space<vmem>>, vector<2x128xf32>,
    %182 = arith.truncf %180 : vector<2x128xf32> to vector<2x128xbf16>
    %c1 = arith.constant 1 : index
    %c0_91 = arith.constant 0 : index
    %c0_92 = arith.constant 0 : index
    %183 = vector.load %arg5[%c1, %c0_91, %c0_92] : memref<2x128x128xbf16, #tpu.memory_space<vmem>>, vector<1x128x128xbf16>
    %184 = vector.shape_cast %183 : vector<1x128x128xbf16> to vector<128x128xbf16>
    %cst_93 = arith.constant dense<0.000000e+00> : vector<2x128xf32>
    %185 = tpu.matmul %182, %184, %cst_93 {dimension_numbers = #tpu.dot_dimension_numbers<[1], [0], [0], [1], [0, 0, 1, 1], [], []>} : vector<2x128xbf16>, vector<128x128xbf16>, vector<2x128xf32> -> vector<2x128xf32>
    %c1_94 = arith.constant 1 : index
    %c0_95 = arith.constant 0 : index
    %c0_96 = arith.constant 0 : index
    %186 = vector.load %arg6[%c1_94, %c0_95, %c0_96] : memref<2x1x128xf32, #tpu.memory_space<vmem>>, vector<1x1x128xf32>
    %187 = vector.shape_cast %186 : vector<1x1x128xf32> to vector<1x128xf32>
    %188 = vector.broadcast %187 : vector<1x128xf32> to vector<2x128xf32>
    %189 = arith.addf %185, %188 : vector<2x128xf32>
    %cst_97 = arith.constant dense<0.000000e+00> : vector<128xf32>
    %190 = vector.multi_reduction <add>, %189, %cst_97 [0] : vector<2x128xf32> to vector<128xf32>
    %191 = vector.shape_cast %190 : vector<128xf32> to vector<1x128xf32>
    %cst_98 = arith.constant 5.000000e-01 : f32
    %192 = vector.broadcast %cst_98 : f32 to vector<1x128xf32>
    %193 = arith.mulf %191, %192 : vector<1x128xf32>
    %194 = arith.mulf %189, %189 : vector<2x128xf32>
    %cst_99 = arith.constant dense<0.000000e+00> : vector<128xf32>
    %195 = vector.multi_reduction <add>, %194, %cst_99 [0] : vector<2x128xf32> to vector<128xf32>
    %196 = vector.shape_cast %195 : vector<128xf32> to vector<1x128xf32>
    %cst_100 = arith.constant 5.000000e-01 : f32
    %197 = vector.broadcast %cst_100 : f32 to vector<1x128xf32>
    %198 = arith.mulf %196, %197 : vector<1x128xf32>
    %199 = arith.mulf %193, %193 : vector<1x128xf32>
    %200 = arith.subf %198, %199 : vector<1x128xf32>
    %cst_101 = arith.constant 0.000000e+00 : f32
    %201 = vector.broadcast %cst_101 : f32 to vector<1x128xf32>
    %202 = arith.maximumf %200, %201 : vector<1x128xf32>
    %c1_102 = arith.constant 1 : index
    %c0_103 = arith.constant 0 : index
    %c0_104 = arith.constant 0 : index
    %203 = vector.load %arg7[%c1_102, %c0_103, %c0_104] : memref<2x1x128xf32, #tpu.memory_space<vmem>>, vector<1x1x128xf32>
    %204 = vector.shape_cast %203 : vector<1x1x128xf32> to vector<1x128xf32>
    %cst_105 = arith.constant 9.99999974E-6 : f32
    %205 = vector.broadcast %cst_105 : f32 to vector<1x128xf32>
    %206 = arith.addf %202, %205 : vector<1x128xf32>
    %207 = math.rsqrt %206 : vector<1x128xf32>
    %208 = arith.mulf %204, %207 : vector<1x128xf32>
    %c1_106 = arith.constant 1 : index
    %c0_107 = arith.constant 0 : index
    %c0_108 = arith.constant 0 : index
    %209 = vector.load %arg8[%c1_106, %c0_107, %c0_108] : memref<2x1x128xf32, #tpu.memory_space<vmem>>, vector<1x1x128xf32>
    %210 = vector.shape_cast %209 : vector<1x1x128xf32> to vector<1x128xf32>
    %211 = arith.mulf %193, %208 : vector<1x128xf32>
    %212 = arith.subf %210, %211 : vector<1x128xf32>
    %213 = vector.broadcast %208 : vector<1x128xf32> to vector<2x128xf32>
    %214 = arith.mulf %189, %213 : vector<2x128xf32>
    %215 = vector.broadcast %212 : vector<1x128xf32> to vector<2x128xf32>
    %216 = arith.addf %214, %215 : vector<2x128xf32>
    %cst_109 = arith.constant 0.000000e+00 : f32
    %217 = vector.broadcast %cst_109 : f32 to vector<2x128xf32>
    %218 = arith.maximumf %216, %217 : vector<2x128xf32>
    %219 = arith.truncf %218 : vector<2x128xf32> to vector<2x128xbf16>
    %c1_110 = arith.constant 1 : index
    %c0_111 = arith.constant 0 : index
    %c0_112 = arith.constant 0 : index
    %220 = vector.load %arg9[%c1_110, %c0_111, %c0_112] : memref<2x128x128xbf16, #tpu.memory_space<vmem>>, vector<1x128x128xbf16>
    %221 = vector.shape_cast %220 : vector<1x128x128xbf16> to vector<128x128xbf16>
    %cst_113 = arith.constant dense<0.000000e+00> : vector<2x128xf32>
    %222 = tpu.matmul %219, %221, %cst_113 {dimension_numbers = #tpu.dot_dimension_numbers<[1], [0], [0], [1], [0, 0, 1, 1], [], []>} : vector<2x128xbf16>, vector<128x128xbf16>, vector<2x128xf32> -> vector<2x128xf32>
    %c1_114 = arith.constant 1 : index
    %c0_115 = arith.constant 0 : index
    %c0_116 = arith.constant 0 : index
    %223 = vector.load %arg10[%c1_114, %c0_115, %c0_116] : memref<2x1x128xf32, #tpu.memory_space<vmem>>, vector<1x1x128xf32>
    %224 = vector.shape_cast %223 : vector<1x1x128xf32> to vector<1x128xf32>
    %225 = vector.broadcast %224 : vector<1x128xf32> to vector<2x128xf32>
    %226 = arith.addf %222, %225 : vector<2x128xf32>
    %c0_117 = arith.constant 0 : index
    %c0_118 = arith.constant 0 : index
    %227 = vector.load %arg12[%c0_117, %c0_118] : memref<2x128xf32, #tpu.memory_space<vmem>>, vector<2x128xf32>
    tpu.vector_store %arg12[%c0_117, %c0_118], %226 {strides = array<i32>} : memref<2x128xf32, #tpu.memory_space<vmem>>, vector<2x128xf32>,
    return
  }
}

</mosaic_0001>

<bundles_post_ra>
// kernel: tpu_custom_call.1
= control target key start
LH: loop header
LB: loop body
LE: loop exit
PB: predicated region body
PF: predicated region fallthrough
CT: control target
= control target key end

     0   :  { %18 = vsyncpa [#allocation3], 0  ;;  %s3667_s0 = inlined_call_operand.hbm [shape: bf16[512,128], index: 0, kind: input, shape index: {}]   ;;  %s3668_s1 = inlined_call_operand.hbm [shape: bf16[128,128], index: 1, kind: input, shape index: {}]   ;;  %s3669_s2 = inlined_call_operand.vmem [shape: f32[1,128], index: 2, kind: input, shape index: {}]   ;;  %s3670_s3 = inlined_call_operand.hbm [shape: f32[1,128], index: 3, kind: input, shape index: {}]   ;;  %s3671_s4 = inlined_call_operand.hbm [shape: bf16[4,16,128], index: 4, kind: input, shape index: {}]   ;;  %s3672_s5 = inlined_call_operand.hbm [shape: bf16[2,128,128], index: 5, kind: input, shape index: {}]   ;;  %s3673_s6 = inlined_call_operand.vmem [shape: f32[2,1,128], index: 6, kind: input, shape index: {}]   ;;  %s3674_s7 = inlined_call_operand.vmem [shape: f32[2,1,128], index: 7, kind: input, shape index: {}]   ;;  %s3675_s8 = inlined_call_operand.vmem [shape: f32[2,1,128], index: 8, kind: input, shape index: {}]   ;;  %s3676_s9 = inlined_call_operand.hbm [shape: bf16[2,128,128], index: 9, kind: input, shape index: {}]   ;;  %s3677_s10 = inlined_call_operand.vmem [shape: f32[2,1,128], index: 10, kind: input, shape index: {}]   ;;  %s3678_s11 = inlined_call_operand.hbm [shape: f32[2,128], index: 11, kind: output, shape index: {0}]   ;;  %s3679_s12 = inlined_call_operand.hbm [shape: f32[2,128], index: 12, kind: output, shape index: {1}]  }
   0x1   :  { %19 = vsyncpa [#allocation6], 0 }
   0x2   :  { %20 = vsyncpa [#allocation9], 0 }
   0x3   :  { %21 = vsyncpa [#allocation12], 0 }
   0x4   :  { %22 = vsyncpa [#allocation4], 0 }
   0x5   :  { %23 = vsyncpa [#allocation15], 0  ;;  %s2866_s21 = smov [#allocation5]   ;;  %s2867_s23 = smov [#allocation8]  }
   0x6   :  { %s41_s22 = sshll.u32 %s2866_s21, 4  ;;  %s65_s24 = sshll.u32 %s2867_s23, 4  ;;  %s42_s22 = int_to_ptr.vmem [resolvable:$true] %s41_s22  ;;  %s66_s24 = int_to_ptr.vmem [resolvable:$true] %s65_s24 }
   0x7   :  { %s2702_s25 = scalar_lea.vmem %s42_s22, 1024  ;;  %p2707_p1 = scmp.lt.s32.totalorder %s42_s22, %s42_s22 }
   0x8   :  { %p2703_p0 = scmp.ne.s32.totalorder %s42_s22, %s2702_s25  ;;  %p2708_p2 = scmp.lt.s32.totalorder %s2702_s25, %s2702_s25 }
   0xa   :  { %p2709_p3 = por %p2708_p2, %p2707_p1 }
   0xc   :  { %p2710_p4 = pnand %p2709_p3, %p2703_p0 }
   0xe   :  { %2713 = shalt.err (!%p2710_p4)
}
   0xf   :  { %s2868_s26 = smov 64   ;;  %s2869_s27 = smov 4  }
  0x10   :  { %47 = dma.hbm_to_vmem [thread:$0]  %s3668_s1, 1024, %s42_s22, [#allocation6], %s2868_s26, %s2868_s26, %s2869_s27  }
  0x11   :  { %s2722_s30 = scalar_lea.vmem %s66_s24, 512  ;;  %p2727_p6 = scmp.lt.s32.totalorder %s66_s24, %s66_s24 }
  0x12   :  { %p2723_p5 = scmp.ne.s32.totalorder %s66_s24, %s2722_s30  ;;  %p2728_p7 = scmp.lt.s32.totalorder %s2722_s30, %s2722_s30 }
  0x14   :  { %p2729_p8 = por %p2728_p7, %p2727_p6 }
  0x16   :  { %p2730_p9 = pnand %p2729_p8, %p2723_p5 }
  0x18   :  { %2733 = shalt.err (!%p2730_p9)
}
  0x19   :  { %71 = dma.hbm_to_vmem [thread:$0]  %s3671_s4, 512, %s66_s24, [#allocation9], %s2868_s26, %s2868_s26, %s2869_s27  }
  0x1a   :  { %s2870_s15 = smov [#allocation2]   ;;  %s2871_s17 = smov [#allocation7]  }
  0x1b   :  { %s29_s16 = sshll.u32 %s2870_s15, 4  ;;  %s56_s18 = sshll.u32 %s2871_s17, 4  ;;  %s30_s16 = int_to_ptr.vmem [resolvable:$true] %s29_s16  ;;  %s57_s18 = int_to_ptr.vmem [resolvable:$true] %s56_s18 }
  0x1c   :  { %s2742_s1 = scalar_lea.vmem %s30_s16, 4096  ;;  %p2747_p11 = scmp.lt.s32.totalorder %s30_s16, %s30_s16 }
  0x1d   :  { %p2743_p10 = scmp.ne.s32.totalorder %s30_s16, %s2742_s1  ;;  %p2748_p12 = scmp.lt.s32.totalorder %s2742_s1, %s2742_s1 }
  0x1f   :  { %p2749_p13 = por %p2748_p12, %p2747_p11 }
  0x21   :  { %p2750_p0 = pnand %p2749_p13, %p2743_p10 }
  0x23   :  { %2753 = shalt.err (!%p2750_p0)
}
  0x24   :  { %35 = dma.hbm_to_vmem [thread:$0]  %s3667_s0, 4096, %s30_s16, [#allocation3], %s2868_s26, %s2868_s26, %s2869_s27  }
  0x25   :  { %s2762_s4 = scalar_lea.vmem %s57_s18, 16  ;;  %s2766_s21 = scalar_lea.vmem %s57_s18, 32 }
  0x26   :  { %p2763_p1 = scmp.ne.s32.totalorder %s57_s18, %s2762_s4  ;;  %p2767_p2 = scmp.lt.s32.totalorder %s57_s18, %s57_s18 }
  0x27   :  { %p2768_p3 = scmp.lt.s32.totalorder %s2766_s21, %s2762_s4 }
  0x29   :  { %p2769_p4 = por %p2768_p3, %p2767_p2 }
  0x2b   :  { %p2770_p5 = pnand %p2769_p4, %p2763_p1 }
  0x2d   :  { %2773 = shalt.err (!%p2770_p5)
}
  0x2e   :  { %59 = dma.hbm_to_vmem [thread:$0]  %s3670_s3, 16, %s57_s18, [#allocation6]  }
  0x2f   :  { %s2872_s24 = smov [#allocation10]   ;;  %s2873_s28 = smov [#allocation11]  }
  0x30   :  { %s77_s25 = sshll.u32 %s2872_s24, 4  ;;  %s95_s29 = sshll.u32 %s2873_s28, 4  ;;  %s78_s25 = int_to_ptr.vmem [resolvable:$true] %s77_s25  ;;  %s96_s29 = int_to_ptr.vmem [resolvable:$true] %s95_s29 }
  0x31   :  { %s2782_s30 = scalar_lea.vmem %s78_s25, 2048  ;;  %p2787_p7 = scmp.lt.s32.totalorder %s78_s25, %s78_s25 }
  0x32   :  { %p2783_p6 = scmp.ne.s32.totalorder %s78_s25, %s2782_s30  ;;  %p2788_p8 = scmp.lt.s32.totalorder %s2782_s30, %s2782_s30 }
  0x34   :  { %p2789_p9 = por %p2788_p8, %p2787_p7 }
  0x36   :  { %p2790_p10 = pnand %p2789_p9, %p2783_p6 }
  0x38   :  { %2793 = shalt.err (!%p2790_p10)
}
  0x39   :  { %83 = dma.hbm_to_vmem [thread:$0]  %s3672_s5, 2048, %s78_s25, [#allocation9], %s2868_s26, %s2868_s26, %s2869_s27  }
  0x3a   :  { %s2802_s3 = scalar_lea.vmem %s96_s29, 2048  ;;  %p2807_p12 = scmp.lt.s32.totalorder %s96_s29, %s96_s29 }
  0x3b   :  { %p2803_p11 = scmp.ne.s32.totalorder %s96_s29, %s2802_s3  ;;  %p2808_p13 = scmp.lt.s32.totalorder %s2802_s3, %s2802_s3 }
  0x3d   :  { %p2809_p0 = por %p2808_p13, %p2807_p12 }
  0x3f   :  { %p2810_p1 = pnand %p2809_p0, %p2803_p11 }
  0x41   :  { %2813 = shalt.err (!%p2810_p1)
}
  0x42   :  { %101 = dma.hbm_to_vmem [thread:$0]  %s3676_s9, 2048, %s96_s29, [#allocation12], %s2868_s26, %s2868_s26, %s2869_s27  }
  0x43   :  { %2854 = dma.done.wait [#allocation3], 4096  }
  0x44   :  { %2855 = vsyncadd [#allocation3], 4294963200 }
  0x45   :  { %2856 = dma.done.wait [#allocation6], 1040  }
  0x46   :  { %2857 = vsyncadd [#allocation6], 4294966256 }
  0x47   :  { %2858 = dma.done.wait [#allocation9], 2560  }
  0x48   :  { %2859 = vsyncadd [#allocation9], 4294964736 }
  0x49   :  { %2860 = dma.done.wait [#allocation12], 2048  }
  0x4a   :  { %2861 = vsyncadd [#allocation12], 4294965248  ;;  %v2612_v0 = vld [vmem:[#allocation5 + $0x38] sm:$0xff]   ;;  %v2613_v1 = vld [vmem:[#allocation5 + $0x30] sm:$0xff]   ;;  %vm2875_vm0 = vmmov 0   ;;  %vm1631_vm1 = vcmask 1041408  }
  0x4b   :  { %2312 = vmatprep.subr.bf16.mxu0 %v2612_v0  ;;  %2344 = vmatprep.subr.bf16.mxu1 %v2612_v0  ;;  %v2614_v2 = vld [vmem:[#allocation5 + $0x28] sm:$0xff]   ;;  %v2976_v3 = vld [vmem:[#allocation5 + $0x20] sm:$0xff]   ;;  %v2980_v6 = vld [vmem:[#allocation5 + $0x18] sm:$0xff]   ;;  %s2876_s24 = smov [#allocation13]  }
  0x4c   :  { %2313 = vmatpush3.bf16.msra.mxu0 %v2612_v0  ;;  %2345 = vmatpush3.bf16.msra.mxu1 %v2612_v0  ;;  %v2620_v4 = vld [vmem:[#allocation2] sm:$0xff]   ;;  %v2986_v7 = vld [vmem:[#allocation5 + $0x10] sm:$0xff]   ;;  %v2992_v8 = vld [vmem:[#allocation5 + $0x8] sm:$0xff]   ;;  %s2066_s25 = sshll.u32 %s2876_s24, 4  ;;  %s2067_s25 = int_to_ptr.vmem [resolvable:$true] %s2066_s25 }
  0x4d   :  { %2314 = vmatprep.subr.bf16.mxu0 %v2613_v1  ;;  %2346 = vmatprep.subr.bf16.mxu1 %v2613_v1  ;;  %v2621_v5 = vld [vmem:[#allocation2 + $0x40] sm:$0xff]   ;;  %v2622_v10 = vld [vmem:[#allocation2 + $0x8] sm:$0xff]   ;;  %v2624_v12 = vld [vmem:[#allocation2 + $0x10] sm:$0xff]   ;;  %p2819_p3 = scmp.lt.s32.totalorder %s2067_s25, %s2067_s25 }
  0x4e   :  { %2328 = vmatprep.mubr.bf16.mxu0 %v2620_v4  ;;  %2360 = vmatprep.mubr.bf16.mxu1 %v2621_v5  ;;  %v2998_v9 = vld [vmem:[#allocation5] sm:$0xff]   ;;  %v2623_v11 = vld [vmem:[#allocation2 + $0x48] sm:$0xff]   ;;  %v2625_v13 = vld [vmem:[#allocation2 + $0x50] sm:$0xff]  }
  0x4f   :  { %v2626_v14 = vld [vmem:[#allocation2 + $0x18] sm:$0xff]   ;;  %v2628_v16 = vld [vmem:[#allocation2 + $0x20] sm:$0xff]   ;;  %v2630_v18 = vld [vmem:[#allocation2 + $0x28] sm:$0xff]  }
  0x50   :  { %2315 = vmatpush3.bf16.msra.mxu0 %v2613_v1  ;;  %2347 = vmatpush3.bf16.msra.mxu1 %v2613_v1  ;;  %v2627_v15 = vld [vmem:[#allocation2 + $0x58] sm:$0xff]   ;;  %v2629_v17 = vld [vmem:[#allocation2 + $0x60] sm:$0xff]   ;;  %v2631_v19 = vld [vmem:[#allocation2 + $0x68] sm:$0xff]  }
  0x51   :  { %2316 = vmatprep.subr.bf16.mxu0 %v2614_v2  ;;  %2348 = vmatprep.subr.bf16.mxu1 %v2614_v2  ;;  %v2632_v20 = vld [vmem:[#allocation2 + $0x30] sm:$0xff]   ;;  %v2634_v22 = vld [vmem:[#allocation2 + $0x38] sm:$0xff]   ;;  %v2636_v24 = vld [vmem:[#allocation2 + $0x80] sm:$0xff]  }
  0x52   :  { %v2633_v21 = vld [vmem:[#allocation2 + $0x70] sm:$0xff]   ;;  %v2635_v23 = vld [vmem:[#allocation2 + $0x78] sm:$0xff]   ;;  %v2637_v25 = vld [vmem:[#allocation2 + $0xc0] sm:$0xff]  }
  0x53   :  { %v2638_v26 = vld [vmem:[#allocation2 + $0x88] sm:$0xff]   ;;  %v2640_v28 = vld [vmem:[#allocation2 + $0x90] sm:$0xff]   ;;  %v2642_v30 = vld [vmem:[#allocation2 + $0x98] sm:$0xff]  }
  0x54   :  { %2317 = vmatpush3.bf16.msra.mxu0 %v2614_v2  ;;  %2349 = vmatpush3.bf16.msra.mxu1 %v2614_v2  ;;  %v2639_v27 = vld [vmem:[#allocation2 + $0xc8] sm:$0xff]   ;;  %v2641_v29 = vld [vmem:[#allocation2 + $0xd0] sm:$0xff]   ;;  %v2643_v31 = vld [vmem:[#allocation2 + $0xd8] sm:$0xff]  }
  0x55   :  { %2318 = vmatprep.subr.bf16.mxu0 %v2976_v3  ;;  %2350 = vmatprep.subr.bf16.mxu1 %v2976_v3  ;;  %v2644_v32 = vld [vmem:[#allocation2 + $0xa0] sm:$0xff]   ;;  %v2646_v34 = vld [vmem:[#allocation2 + $0xa8] sm:$0xff]   ;;  %v2648_v36 = vld [vmem:[#allocation2 + $0xb0] sm:$0xff]  }
  0x56   :  { %v2645_v33 = vld [vmem:[#allocation2 + $0xe0] sm:$0xff]   ;;  %v2647_v35 = vld [vmem:[#allocation2 + $0xe8] sm:$0xff]   ;;  %v2649_v37 = vld [vmem:[#allocation2 + $0xf0] sm:$0xff]  }
  0x57   :  { %v2650_v38 = vld [vmem:[#allocation2 + $0xb8] sm:$0xff]  }
  0x58   :  { %2319 = vmatpush3.bf16.msra.mxu0 %v2976_v3  ;;  %2351 = vmatpush3.bf16.msra.mxu1 %v2976_v3  ;;  %v2651_v39 = vld [vmem:[#allocation2 + $0xf8] sm:$0xff]  }
  0x59   :  { %2320 = vmatprep.subr.bf16.mxu0 %v2980_v6  ;;  %2352 = vmatprep.subr.bf16.mxu1 %v2980_v6 }
  0x5c   :  { %2321 = vmatpush3.bf16.msra.mxu0 %v2980_v6  ;;  %2353 = vmatpush3.bf16.msra.mxu1 %v2980_v6 }
  0x5d   :  { %2322 = vmatprep.subr.bf16.mxu0 %v2986_v7  ;;  %2354 = vmatprep.subr.bf16.mxu1 %v2986_v7 }
  0x60   :  { %2323 = vmatpush3.bf16.msra.mxu0 %v2986_v7  ;;  %2355 = vmatpush3.bf16.msra.mxu1 %v2986_v7 }
  0x61   :  { %2324 = vmatprep.subr.bf16.mxu0 %v2992_v8  ;;  %2356 = vmatprep.subr.bf16.mxu1 %v2992_v8 }
  0x64   :  { %2325 = vmatpush3.bf16.msra.mxu0 %v2992_v8  ;;  %2357 = vmatpush3.bf16.msra.mxu1 %v2992_v8 }
  0x65   :  { %2326 = vmatprep.subr.bf16.mxu0 %v2998_v9  ;;  %2358 = vmatprep.subr.bf16.mxu1 %v2998_v9 }
  0x68   :  { %2327 = vmatpush3.bf16.msra.mxu0 %v2998_v9  ;;  %2359 = vmatpush3.bf16.msra.mxu1 %v2998_v9 }
  0x69   :  { %2376 = vmatprep.subr.bf16.mxu0 %v2612_v0  ;;  %2408 = vmatprep.subr.bf16.mxu1 %v2612_v0 }
  0x6b   :  { %2329 = vmatmul.mubr.bf16.vlgmr.msra.gmra.mxu0 %v2622_v10  ;;  %2361 = vmatmul.mubr.bf16.vlgmr.msra.gmra.mxu1 %v2623_v11 }
  0x6c   :  { %2377 = vmatpush3.bf16.msra.mxu0 %v2612_v0  ;;  %2409 = vmatpush3.bf16.msra.mxu1 %v2612_v0 }
  0x6d   :  { %2378 = vmatprep.subr.bf16.mxu0 %v2613_v1  ;;  %2410 = vmatprep.subr.bf16.mxu1 %v2613_v1 }
  0x6e   :  { %2332 = vmatprep.mubr.bf16.mxu0 %v2624_v12  ;;  %2364 = vmatprep.mubr.bf16.mxu1 %v2625_v13 }
  0x70   :  { %2379 = vmatpush3.bf16.msra.mxu0 %v2613_v1  ;;  %2411 = vmatpush3.bf16.msra.mxu1 %v2613_v1 }
  0x71   :  { %2380 = vmatprep.subr.bf16.mxu0 %v2614_v2  ;;  %2412 = vmatprep.subr.bf16.mxu1 %v2614_v2 }
  0x73   :  { %2333 = vmatmul.mubr.bf16.gmra.mxu0 %v2626_v14  ;;  %2365 = vmatmul.mubr.bf16.gmra.mxu1 %v2627_v15 }
  0x74   :  { %2381 = vmatpush3.bf16.msra.mxu0 %v2614_v2  ;;  %2413 = vmatpush3.bf16.msra.mxu1 %v2614_v2 }
  0x75   :  { %2382 = vmatprep.subr.bf16.mxu0 %v2976_v3  ;;  %2414 = vmatprep.subr.bf16.mxu1 %v2976_v3 }
  0x76   :  { %2336 = vmatprep.mubr.bf16.mxu0 %v2628_v16  ;;  %2368 = vmatprep.mubr.bf16.mxu1 %v2629_v17 }
  0x78   :  { %2383 = vmatpush3.bf16.msra.mxu0 %v2976_v3  ;;  %2415 = vmatpush3.bf16.msra.mxu1 %v2976_v3 }
  0x79   :  { %2384 = vmatprep.subr.bf16.mxu0 %v2980_v6  ;;  %2416 = vmatprep.subr.bf16.mxu1 %v2980_v6 }
  0x7b   :  { %2337 = vmatmul.mubr.bf16.gmra.mxu0 %v2630_v18  ;;  %2369 = vmatmul.mubr.bf16.gmra.mxu1 %v2631_v19 }
  0x7c   :  { %2385 = vmatpush3.bf16.msra.mxu0 %v2980_v6  ;;  %2417 = vmatpush3.bf16.msra.mxu1 %v2980_v6 }
  0x7d   :  { %2386 = vmatprep.subr.bf16.mxu0 %v2986_v7  ;;  %2418 = vmatprep.subr.bf16.mxu1 %v2986_v7 }
  0x7e   :  { %2340 = vmatprep.mubr.bf16.mxu0 %v2632_v20  ;;  %2372 = vmatprep.mubr.bf16.mxu1 %v2633_v21 }
  0x80   :  { %2387 = vmatpush3.bf16.msra.mxu0 %v2986_v7  ;;  %2419 = vmatpush3.bf16.msra.mxu1 %v2986_v7 }
  0x81   :  { %2388 = vmatprep.subr.bf16.mxu0 %v2992_v8  ;;  %2420 = vmatprep.subr.bf16.mxu1 %v2992_v8 }
  0x83   :  { %2341 = vmatmul.mubr.bf16.gmra.mxu0 %v2634_v22  ;;  %2373 = vmatmul.mubr.bf16.gmra.mxu1 %v2635_v23 }
  0x84   :  { %2389 = vmatpush3.bf16.msra.mxu0 %v2992_v8  ;;  %2421 = vmatpush3.bf16.msra.mxu1 %v2992_v8 }
  0x85   :  { %2390 = vmatprep.subr.bf16.mxu0 %v2998_v9  ;;  %2422 = vmatprep.subr.bf16.mxu1 %v2998_v9 }
  0x86   :  { %2392 = vmatprep.mubr.bf16.mxu0 %v2636_v24  ;;  %2424 = vmatprep.mubr.bf16.mxu1 %v2637_v25 }
  0x88   :  { %2391 = vmatpush3.bf16.msra.mxu0 %v2998_v9  ;;  %2423 = vmatpush3.bf16.msra.mxu1 %v2998_v9 }
  0x8b   :  { %2393 = vmatmul.mubr.bf16.vlgmr.msra.gmra.mxu0 %v2638_v26  ;;  %2425 = vmatmul.mubr.bf16.vlgmr.msra.gmra.mxu1 %v2639_v27 }
  0x8c   :  { %2396 = vmatprep.mubr.bf16.mxu0 %v2640_v28  ;;  %2428 = vmatprep.mubr.bf16.mxu1 %v2641_v29  ;;  %v3680_v29 = vmov 0.0  }
  0x8d   :  { %2440 = vmatprep.subr.bf16.mxu0 %v3680_v29  ;;  %2460 = vmatprep.subr.bf16.mxu1 %v3680_v29 }
  0x93   :  { %2397 = vmatmul.mubr.bf16.gmra.mxu0 %v2642_v30  ;;  %2429 = vmatmul.mubr.bf16.gmra.mxu1 %v2643_v31 }
  0x94   :  { %2400 = vmatprep.mubr.bf16.mxu0 %v2644_v32  ;;  %2432 = vmatprep.mubr.bf16.mxu1 %v2645_v33 }
  0x9b   :  { %2401 = vmatmul.mubr.bf16.gmra.mxu0 %v2646_v34  ;;  %2433 = vmatmul.mubr.bf16.gmra.mxu1 %v2647_v35 }
  0x9c   :  { %2404 = vmatprep.mubr.bf16.mxu0 %v2648_v36  ;;  %2436 = vmatprep.mubr.bf16.mxu1 %v2649_v37 }
  0xa3   :  { %2405 = vmatmul.mubr.bf16.gmra.mxu0 %v2650_v38  ;;  %2437 = vmatmul.mubr.bf16.gmra.mxu1 %v2651_v39 }
 0x12b   :  { %v3026_v40 = vpop.f32.mrf.mxu0  ;;  %v3028_v41 = vpop.f32.mrf.mxu1 }
 0x12c   :  { %v372_v54 = vmul.f32 %v3026_v40, %v3026_v40  ;;  %v594_v61 = vmul.f32 %v3028_v41, %v3028_v41 }
 0x12d   :  { %v3030_v42 = vpop.f32.mrf.mxu0  ;;  %v3032_v43 = vpop.f32.mrf.mxu1 }
 0x12e   :  { %3716 = vst [vmem:[#allocation22_spill] sm:$0xff] %v3032_v43  ;;  %v370_v46 = vmul.f32 %v3030_v42, %v3030_v42  ;;  %v592_v47 = vmul.f32 %v3032_v43, %v3032_v43 }
 0x12f   :  { %v3034_v44 = vpop.f32.mrf.mxu0  ;;  %v3036_v45 = vpop.f32.mrf.mxu1 }
 0x130   :  { %v373_v0 = vmul.f32 %v3034_v44, %v3034_v44  ;;  %v595_v8 = vmul.f32 %v3036_v45, %v3036_v45 }
 0x131   :  { %v3042_v48 = vpop.f32.mrf.mxu0  ;;  %v3044_v49 = vpop.f32.mrf.mxu1 }
 0x132   :  { %3717 = vst [vmem:[#allocation23_spill] sm:$0xff] %v3044_v49  ;;  %v348_v50 = vadd.f32 %v3042_v48, %v3030_v42  ;;  %v371_v51 = vmul.f32 %v3042_v48, %v3042_v48  ;;  %v570_v52 = vadd.f32 %v3044_v49, %v3032_v43  ;;  %v593_v53 = vmul.f32 %v3044_v49, %v3044_v49 }
 0x133   :  { %v3056_v55 = vpop.f32.mrf.mxu0  ;;  %v3058_v56 = vpop.f32.mrf.mxu1 }
 0x134   :  { %v349_v57 = vadd.f32 %v3026_v40, %v348_v50  ;;  %v386_v58 = vadd.f32 %v371_v51, %v370_v46  ;;  %v571_v59 = vadd.f32 %v3028_v41, %v570_v52  ;;  %v608_v60 = vadd.f32 %v593_v53, %v592_v47 }
 0x135   :  { %v3064_v62 = vpop.f32.mrf.mxu0  ;;  %v3066_v63 = vpop.f32.mrf.mxu1  ;;  %v376_v33 = vmul.f32 %v3056_v55, %v3056_v55  ;;  %v598_v39 = vmul.f32 %v3058_v56, %v3058_v56 }
 0x136   :  { %v387_v1 = vadd.f32 %v386_v58, %v372_v54  ;;  %v350_v2 = vadd.f32 %v3034_v44, %v349_v57  ;;  %v609_v3 = vadd.f32 %v608_v60, %v594_v61  ;;  %v572_v4 = vadd.f32 %v3036_v45, %v571_v59 }
 0x137   :  { %v3072_v5 = vpop.f32.mrf.mxu0  ;;  %v3074_v6 = vpop.f32.mrf.mxu1  ;;  %v374_v12 = vmul.f32 %v3064_v62, %v3064_v62  ;;  %v596_v19 = vmul.f32 %v3066_v63, %v3066_v63 }
 0x138   :  { %v388_v7 = vadd.f32 %v387_v1, %v373_v0  ;;  %v351_v9 = vadd.f32 %v350_v2, %v3064_v62  ;;  %v573_v13 = vadd.f32 %v572_v4, %v3066_v63  ;;  %v610_v14 = vadd.f32 %v609_v3, %v595_v8 }
 0x139   :  { %v3079_v10 = vpop.f32.mrf.mxu0  ;;  %v3081_v11 = vpop.f32.mrf.mxu1  ;;  %v377_v51 = vmul.f32 %v3072_v5, %v3072_v5  ;;  %v599_v59 = vmul.f32 %v3074_v6, %v3074_v6 }
 0x13a   :  { %v389_v17 = vadd.f32 %v388_v7, %v374_v12  ;;  %v375_v18 = vmul.f32 %v3079_v10, %v3079_v10  ;;  %v352_v20 = vadd.f32 %v351_v9, %v3079_v10  ;;  %v574_v23 = vadd.f32 %v573_v13, %v3081_v11 }
 0x13b   :  { %v3086_v15 = vpop.f32.mrf.mxu0  ;;  %v3088_v16 = vpop.f32.mrf.mxu1  ;;  %v611_v24 = vadd.f32 %v610_v14, %v596_v19  ;;  %v597_v25 = vmul.f32 %v3081_v11, %v3081_v11 }
 0x13c   :  { %v390_v28 = vadd.f32 %v389_v17, %v375_v18  ;;  %v353_v30 = vadd.f32 %v3056_v55, %v352_v20  ;;  %v575_v34 = vadd.f32 %v3058_v56, %v574_v23 }
 0x13d   :  { %v3095_v21 = vpop.f32.mrf.mxu0  ;;  %v3097_v22 = vpop.f32.mrf.mxu1  ;;  %v612_v35 = vadd.f32 %v611_v24, %v597_v25 }
 0x13e   :  { %v391_v38 = vadd.f32 %v390_v28, %v376_v33  ;;  %v354_v46 = vadd.f32 %v3072_v5, %v353_v30  ;;  %v576_v52 = vadd.f32 %v3074_v6, %v575_v34  ;;  %v378_v1 = vmul.f32 %v3095_v21, %v3095_v21 }
 0x13f   :  { %v3102_v26 = vpop.f32.mrf.mxu0  ;;  %v3104_v27 = vpop.f32.mrf.mxu1  ;;  %v613_v53 = vadd.f32 %v612_v35, %v598_v39  ;;  %v600_v12 = vmul.f32 %v3097_v22, %v3097_v22  ;;  %v380_v28 = vmul.f32 %v3086_v15, %v3086_v15 }
 0x140   :  { %v392_v58 = vadd.f32 %v391_v38, %v377_v51  ;;  %v355_v60 = vadd.f32 %v354_v46, %v3095_v21  ;;  %v577_v2 = vadd.f32 %v576_v52, %v3097_v22 }
 0x141   :  { %v3108_v31 = vpop.f32.mrf.mxu0  ;;  %v3110_v32 = vpop.f32.mrf.mxu1  ;;  %v614_v3 = vadd.f32 %v613_v53, %v599_v59 }
 0x142   :  { %v393_v8 = vadd.f32 %v392_v58, %v378_v1  ;;  %v379_v9 = vmul.f32 %v3108_v31, %v3108_v31  ;;  %v356_v13 = vadd.f32 %v355_v60, %v3108_v31  ;;  %v578_v18 = vadd.f32 %v577_v2, %v3110_v32 }
 0x143   :  { %v3116_v36 = vpop.f32.mrf.mxu0  ;;  %v3118_v37 = vpop.f32.mrf.mxu1  ;;  %v615_v19 = vadd.f32 %v614_v3, %v600_v12  ;;  %v601_v20 = vmul.f32 %v3110_v32, %v3110_v32 }
 0x144   :  { %v394_v25 = vadd.f32 %v393_v8, %v379_v9  ;;  %v357_v30 = vadd.f32 %v3086_v15, %v356_v13  ;;  %v579_v35 = vadd.f32 %v3088_v16, %v578_v18  ;;  %v602_v9 = vmul.f32 %v3088_v16, %v3088_v16 }
 0x145   :  { %v3123_v47 = vpop.f32.mrf.mxu0  ;;  %v3125_v50 = vpop.f32.mrf.mxu1  ;;  %v616_v51 = vadd.f32 %v615_v19, %v601_v20 }
 0x146   :  { %v395_v1 = vadd.f32 %v394_v25, %v380_v28  ;;  %v358_v12 = vadd.f32 %v3102_v26, %v357_v30  ;;  %v381_v25 = vmul.f32 %v3102_v26, %v3102_v26  ;;  %v580_v29 = vadd.f32 %v3104_v27, %v579_v35 }
 0x147   :  { %v3130_v54 = vpop.f32.mrf.mxu0  ;;  %v3132_v57 = vpop.f32.mrf.mxu1 }
 0x149   :  { %v3137_v61 = vpop.f32.mrf.mxu0  ;;  %v3139_v0 = vpop.f32.mrf.mxu1 }
 0x14b   :  { %v3144_v4 = vpop.f32.mrf.mxu0  ;;  %v3146_v7 = vpop.f32.mrf.mxu1 }
 0x14c   :  { %3718 = vst [vmem:[#allocation24_spill] sm:$0xff] %v3144_v4  ;;  %3719 = vst [vmem:[#allocation25_spill] sm:$0xff] %v3146_v7  ;;  %v816_v2 = vmul.f32 %v3144_v4, %v3144_v4  ;;  %v1038_v28 = vmul.f32 %v3146_v7, %v3146_v7 }
 0x14d   :  { %v3153_v14 = vpop.f32.mrf.mxu0  ;;  %v3155_v17 = vpop.f32.mrf.mxu1 }
 0x14e   :  { %3720 = vst [vmem:[#allocation26_spill] sm:$0xff] %v3153_v14  ;;  %3721 = vst [vmem:[#allocation27_spill] sm:$0xff] %v3155_v17  ;;  %v814_v38 = vmul.f32 %v3153_v14, %v3153_v14  ;;  %v1036_v52 = vmul.f32 %v3155_v17, %v3155_v17 }
 0x14f   :  { %v3160_v23 = vpop.f32.mrf.mxu0  ;;  %v3162_v24 = vpop.f32.mrf.mxu1 }
 0x150   :  { %3722 = vst [vmem:[#allocation28_spill] sm:$0xff] %v3160_v23  ;;  %3723 = vst [vmem:[#allocation29_spill] sm:$0xff] %v3162_v24  ;;  %v817_v30 = vmul.f32 %v3160_v23, %v3160_v23  ;;  %v1039_v35 = vmul.f32 %v3162_v24, %v3162_v24 }
 0x151   :  { %v3167_v33 = vpop.f32.mrf.mxu0  ;;  %v3169_v34 = vpop.f32.mrf.mxu1 }
 0x152   :  { %3724 = vst [vmem:[#allocation30_spill] sm:$0xff] %v3167_v33  ;;  %3725 = vst [vmem:[#allocation31_spill] sm:$0xff] %v3169_v34  ;;  %v792_v39 = vadd.f32 %v3167_v33, %v3153_v14  ;;  %v815_v46 = vmul.f32 %v3167_v33, %v3167_v33  ;;  %v1014_v53 = vadd.f32 %v3169_v34, %v3155_v17 }
 0x153   :  { %v1037_v58 = vmul.f32 %v3169_v34, %v3169_v34  ;;  %v3184_v59 = vpop.f32.mrf.mxu0  ;;  %v3186_v60 = vpop.f32.mrf.mxu1  ;;  %v359_v33 = vadd.f32 %v358_v12, %v3123_v47  ;;  %v604_v12 = vmul.f32 %v3125_v50, %v3125_v50  ;;  %v581_v14 = vadd.f32 %v580_v29, %v3125_v50 }
 0x154   :  { %3726 = vst [vmem:[#allocation32_spill] sm:$0xff] %v3184_v59  ;;  %3727 = vst [vmem:[#allocation33_spill] sm:$0xff] %v3186_v60  ;;  %v793_v3 = vadd.f32 %v3144_v4, %v792_v39  ;;  %v830_v8 = vadd.f32 %v815_v46, %v814_v38  ;;  %v1015_v13 = vadd.f32 %v3146_v7, %v1014_v53 }
 0x155   :  { %v1052_v18 = vadd.f32 %v1037_v58, %v1036_v52  ;;  %v3195_v19 = vpop.f32.mrf.mxu0  ;;  %v3197_v20 = vpop.f32.mrf.mxu1  ;;  %v603_v38 = vmul.f32 %v3104_v27, %v3104_v27  ;;  %v617_v46 = vadd.f32 %v616_v51, %v602_v9  ;;  %v396_v58 = vadd.f32 %v395_v1, %v381_v25 }
 0x156   :  { %3728 = vst [vmem:[#allocation34_spill] sm:$0xff] %v3195_v19  ;;  %3729 = vst [vmem:[#allocation35_spill] sm:$0xff] %v3197_v20  ;;  %v831_v39 = vadd.f32 %v830_v8, %v816_v2  ;;  %v794_v17 = vadd.f32 %v3160_v23, %v793_v3  ;;  %v818_v2 = vmul.f32 %v3195_v19, %v3195_v19 }
 0x157   :  { %v3207_v53 = vpop.f32.mrf.mxu0  ;;  %v3209_v52 = vpop.f32.mrf.mxu1  ;;  %v1053_v34 = vadd.f32 %v1052_v18, %v1038_v28  ;;  %v1016_v51 = vadd.f32 %v3162_v24, %v1015_v13  ;;  %v382_v1 = vmul.f32 %v3123_v47, %v3123_v47  ;;  %v618_v18 = vadd.f32 %v617_v46, %v603_v38 }
 0x158   :  { %3730 = vst [vmem:[#allocation36_spill] sm:$0xff] %v3207_v53  ;;  %3731 = vst [vmem:[#allocation37_spill] sm:$0xff] %v3209_v52  ;;  %v832_v8 = vadd.f32 %v831_v39, %v817_v30  ;;  %v795_v3 = vadd.f32 %v794_v17, %v3195_v19  ;;  %v1040_v23 = vmul.f32 %v3197_v20, %v3197_v20 }
 0x159   :  { %v3217_v9 = vpop.f32.mrf.mxu0  ;;  %v3219_v7 = vpop.f32.mrf.mxu1  ;;  %v1017_v28 = vadd.f32 %v1016_v51, %v3197_v20  ;;  %v397_v30 = vadd.f32 %v396_v58, %v382_v1  ;;  %v1054_v24 = vadd.f32 %v1053_v34, %v1039_v35  ;;  %v360_v17 = vadd.f32 %v359_v33, %v3137_v61 }
 0x15a   :  { %3732 = vst [vmem:[#allocation38_spill] sm:$0xff] %v3217_v9  ;;  %3733 = vst [vmem:[#allocation39_spill] sm:$0xff] %v3219_v7  ;;  %v833_v25 = vadd.f32 %v832_v8, %v818_v2  ;;  %v383_v4 = vmul.f32 %v3137_v61, %v3137_v61  ;;  %v796_v38 = vadd.f32 %v795_v3, %v3217_v9 }
 0x15b   :  { %v3229_v13 = vpop.f32.mrf.mxu0  ;;  %v3231_v39 = vpop.f32.mrf.mxu1  ;;  %v819_v46 = vmul.f32 %v3217_v9, %v3217_v9  ;;  %v605_v29 = vmul.f32 %v3139_v0, %v3139_v0  ;;  %v1055_v58 = vadd.f32 %v1054_v24, %v1040_v23  ;;  %v1018_v34 = vadd.f32 %v1017_v28, %v3219_v7 }
 0x15c   :  { %3734 = vst [vmem:[#allocation40_spill] sm:$0xff] %v3229_v13  ;;  %3735 = vst [vmem:[#allocation41_spill] sm:$0xff] %v3231_v39  ;;  %v1041_v33 = vmul.f32 %v3219_v7, %v3219_v7  ;;  %v619_v51 = vadd.f32 %v618_v18, %v604_v12  ;;  %v820_v1 = vmul.f32 %v3184_v59, %v3184_v59 }
 0x15d   :  { %v3242_v2 = vpop.f32.mrf.mxu0  ;;  %v3244_v8 = vpop.f32.mrf.mxu1  ;;  %v797_v35 = vadd.f32 %v3184_v59, %v796_v38  ;;  %v834_v3 = vadd.f32 %v833_v25, %v819_v46  ;;  %v582_v19 = vadd.f32 %v581_v14, %v3139_v0  ;;  %v1042_v23 = vmul.f32 %v3186_v60, %v3186_v60 }
 0x15e   :  { %3736 = vst [vmem:[#allocation42_spill] sm:$0xff] %v3242_v2  ;;  %3737 = vst [vmem:[#allocation43_spill] sm:$0xff] %v3244_v8  ;;  %v1019_v24 = vadd.f32 %v3186_v60, %v1018_v34  ;;  %v1056_v28 = vadd.f32 %v1055_v58, %v1041_v33  ;;  %v361_v12 = vadd.f32 %v3116_v36, %v360_v17 }
 0x15f   :  { %v3254_v20 = vpop.f32.mrf.mxu0  ;;  %v3256_v9 = vpop.f32.mrf.mxu1  ;;  %v821_v18 = vmul.f32 %v3207_v53, %v3207_v53  ;;  %v835_v7 = vadd.f32 %v834_v3, %v820_v1  ;;  %v798_v25 = vadd.f32 %v3207_v53, %v797_v35  ;;  %v398_v59 = vadd.f32 %v397_v30, %v383_v4 }
 0x160   :  { %3738 = vst [vmem:[#allocation44_spill] sm:$0xff] %v3254_v20  ;;  %3739 = vst [vmem:[#allocation45_spill] sm:$0xff] %v3256_v9  ;;  %v1043_v14 = vmul.f32 %v3209_v52, %v3209_v52  ;;  %v1057_v49 = vadd.f32 %v1056_v28, %v1042_v23  ;;  %v1020_v34 = vadd.f32 %v3209_v52, %v1019_v24 }
 0x161   :  { %v3266_v38 = vpop.f32.mrf.mxu0  ;;  %v3268_v46 = vpop.f32.mrf.mxu1  ;;  %v799_v58 = vadd.f32 %v798_v25, %v3242_v2  ;;  %v822_v17 = vmul.f32 %v3242_v2, %v3242_v2  ;;  %v836_v33 = vadd.f32 %v835_v7, %v821_v18  ;;  %v1044_v30 = vmul.f32 %v3244_v8, %v3244_v8 }
 0x162   :  { %3740 = vst [vmem:[#allocation46_spill] sm:$0xff] %v3266_v38  ;;  %3741 = vst [vmem:[#allocation47_spill] sm:$0xff] %v3268_v46  ;;  %v823_v1 = vmul.f32 %v3266_v38, %v3266_v38  ;;  %v1021_v4 = vadd.f32 %v1020_v34, %v3244_v8  ;;  %v1058_v23 = vadd.f32 %v1057_v49, %v1043_v14 }
 0x163   :  { %v3278_v35 = vpop.f32.mrf.mxu0  ;;  %v3280_v3 = vpop.f32.mrf.mxu1  ;;  %v1045_v24 = vmul.f32 %v3268_v46, %v3268_v46  ;;  %v384_v28 = vmul.f32 %v3116_v36, %v3116_v36  ;;  %v583_v7 = vadd.f32 %v3118_v37, %v582_v19  ;;  %v837_v18 = vadd.f32 %v836_v33, %v822_v17 }
 0x164   :  { %3742 = vst [vmem:[#allocation48_spill] sm:$0xff] %v3278_v35  ;;  %3743 = vst [vmem:[#allocation49_spill] sm:$0xff] %v3280_v3  ;;  %v800_v25 = vadd.f32 %v799_v58, %v3266_v38  ;;  %v606_v34 = vmul.f32 %v3118_v37, %v3118_v37  ;;  %v620_v53 = vadd.f32 %v619_v51, %v605_v29 }
 0x165   :  { %v3291_v52 = vpop.f32.mrf.mxu0  ;;  %v3293_v60 = vpop.f32.mrf.mxu1  ;;  %v1059_v49 = vadd.f32 %v1058_v23, %v1044_v30  ;;  %v1022_v14 = vadd.f32 %v1021_v4, %v3268_v46  ;;  %v362_v8 = vadd.f32 %v3130_v54, %v361_v12  ;;  %v824_v2 = vmul.f32 %v3229_v13, %v3229_v13 }
 0x166   :  { %3744 = vst [vmem:[#allocation50_spill] sm:$0xff] %v3291_v52  ;;  %3745 = vst [vmem:[#allocation51_spill] sm:$0xff] %v3293_v60  ;;  %v801_v19 = vadd.f32 %v3229_v13, %v800_v25  ;;  %v838_v17 = vadd.f32 %v837_v18, %v823_v1  ;;  %v399_v38 = vadd.f32 %v398_v59, %v384_v28  ;;  %v3750_v46 = vmov 0.0  }
 0x167   :  { %v3302_v58 = vpop.f32.mrf.mxu0  ;;  %v3304_v33 = vpop.f32.mrf.mxu1  ;;  %v1046_v43 = vmul.f32 %v3231_v39, %v3231_v39  ;;  %v1023_v29 = vadd.f32 %v3231_v39, %v1022_v14  ;;  %v1060_v51 = vadd.f32 %v1059_v49, %v1045_v24  ;;  %v584_v4 = vadd.f32 %v3132_v57, %v583_v7  ;;  %2456 = vmatprep.mubr.msk.bf16.mxu0 %vm2875_vm0, %v3750_v46 }
 0x168   :  { %3746 = vst [vmem:[#allocation52_spill] sm:$0xff] %v3302_v58  ;;  %3747 = vst [vmem:[#allocation53_spill] sm:$0xff] %v3304_v33  ;;  %v825_v12 = vmul.f32 %v3254_v20, %v3254_v20  ;;  %v839_v30 = vadd.f32 %v838_v17, %v824_v2  ;;  %v802_v23 = vadd.f32 %v3254_v20, %v801_v19  ;;  %2476 = vmatprep.mubr.msk.bf16.mxu1 %vm2875_vm0, %v3750_v46 }
 0x169   :  { %v3313_v1 = vpop.f32.mrf.mxu0  ;;  %v3315_v18 = vpop.f32.mrf.mxu1  ;;  %v621_v25 = vadd.f32 %v620_v53, %v606_v34  ;;  %v1047_v59 = vmul.f32 %v3256_v9, %v3256_v9  ;;  %v1061_v28 = vadd.f32 %v1060_v51, %v1046_v43  ;;  %v1024_v14 = vadd.f32 %v3256_v9, %v1023_v29 }
 0x16a   :  { %3748 = vst [vmem:[#allocation54_spill] sm:$0xff] %v3313_v1  ;;  %3749 = vst [vmem:[#allocation55_spill] sm:$0xff] %v3315_v18  ;;  %v803_v24 = vadd.f32 %v802_v23, %v3291_v52  ;;  %v826_v7 = vmul.f32 %v3291_v52, %v3291_v52  ;;  %v840_v49 = vadd.f32 %v839_v30, %v825_v12  ;;  %v363_v30 = vrot.slane %v362_v8, 4 }
 0x16b   :  { %v827_v2 = vmul.f32 %v3313_v1, %v3313_v1  ;;  %v1025_v19 = vadd.f32 %v1024_v14, %v3293_v60  ;;  %v1048_v53 = vmul.f32 %v3293_v60, %v3293_v60  ;;  %v1062_v34 = vadd.f32 %v1061_v28, %v1047_v59 }
 0x16c   :  { %v1049_v43 = vmul.f32 %v3315_v18, %v3315_v18  ;;  %v385_v17 = vmul.f32 %v3130_v54, %v3130_v54  ;;  %v841_v29 = vadd.f32 %v840_v49, %v826_v7  ;;  %v804_v51 = vadd.f32 %v803_v24, %v3313_v1 }
 0x16d   :  { %v607_v12 = vmul.f32 %v3132_v57, %v3132_v57  ;;  %v1063_v23 = vadd.f32 %v1062_v34, %v1048_v53  ;;  %v1026_v14 = vadd.f32 %v1025_v19, %v3315_v18  ;;  %v828_v28 = vmul.f32 %v3278_v35, %v3278_v35 }
 0x16e   :  { %v400_v59 = vadd.f32 %v399_v38, %v385_v17  ;;  %v805_v24 = vadd.f32 %v3278_v35, %v804_v51  ;;  %v842_v7 = vadd.f32 %v841_v29, %v827_v2  ;;  %v585_v49 = vrot.slane %v584_v4, 4 }
 0x16f   :  { %v622_v9 = vadd.f32 %v621_v25, %v607_v12  ;;  %v1027_v53 = vadd.f32 %v3280_v3, %v1026_v14  ;;  %v1064_v34 = vadd.f32 %v1063_v23, %v1049_v43  ;;  %v829_v19 = vmul.f32 %v3302_v58, %v3302_v58 }
 0x170   :  { %v806_v39 = vadd.f32 %v3302_v58, %v805_v24  ;;  %v843_v20 = vadd.f32 %v842_v7, %v828_v28  ;;  %v1050_v38 = vmul.f32 %v3280_v3, %v3280_v3  ;;  %v364_v17 = vadd.f32 %v363_v30, %v362_v8 }
 0x171   :  { %v401_v13 = vrot.slane %v400_v59, 4  ;;  %v586_v51 = vadd.f32 %v585_v49, %v584_v4  ;;  %v623_v2 = vrot.slane %v622_v9, 4  ;;  %v1028_v25 = vadd.f32 %v3304_v33, %v1027_v53 }
 0x172   :  { %v807_v60 = vrot.slane %v806_v39, 4  ;;  %v844_v1 = vadd.f32 %v843_v20, %v829_v19  ;;  %v1065_v29 = vadd.f32 %v1064_v34, %v1050_v38  ;;  %v1051_v43 = vmul.f32 %v3304_v33, %v3304_v33 }
 0x173   :  { %v365_v14 = vrot.slane %v364_v17, 2  ;;  %v402_v24 = vadd.f32 %v401_v13, %v400_v59  ;;  %v587_v28 = vrot.slane %v586_v51, 2  ;;  %v624_v7 = vadd.f32 %v623_v2, %v622_v9 }
 0x174   :  { %v808_v12 = vadd.f32 %v807_v60, %v806_v39  ;;  %v845_v23 = vrot.slane %v844_v1, 4  ;;  %v1029_v58 = vrot.slane %v1028_v25, 4  ;;  %v1066_v3 = vadd.f32 %v1065_v29, %v1051_v43 }
 0x175   :  { %v366_v35 = vadd.f32 %v365_v14, %v364_v17  ;;  %v403_v20 = vrot.slane %v402_v24, 2  ;;  %v588_v4 = vadd.f32 %v587_v28, %v586_v51  ;;  %v625_v49 = vrot.slane %v624_v7, 2 }
 0x176   :  { %v809_v8 = vrot.slane %v808_v12, 2  ;;  %v846_v30 = vadd.f32 %v845_v23, %v844_v1  ;;  %v1030_v19 = vadd.f32 %v1029_v58, %v1028_v25  ;;  %v1067_v53 = vrot.slane %v1066_v3, 4 }
 0x177   :  { %v367_v52 = vrot.slane %v366_v35, 1  ;;  %v404_v33 = vadd.f32 %v403_v20, %v402_v24  ;;  %v589_v60 = vrot.slane %v588_v4, 1  ;;  %v626_v39 = vadd.f32 %v625_v49, %v624_v7 }
 0x178   :  { %v810_v34 = vadd.f32 %v809_v8, %v808_v12  ;;  %v847_v38 = vrot.slane %v846_v30, 2  ;;  %v1031_v18 = vrot.slane %v1030_v19, 2  ;;  %v1068_v13 = vadd.f32 %v1067_v53, %v1066_v3 }
 0x179   :  { %v368_v2 = vadd.f32 %v367_v52, %v366_v35  ;;  %v405_v29 = vrot.slane %v404_v33, 1  ;;  %v590_v43 = vadd.f32 %v589_v60, %v588_v4  ;;  %v627_v1 = vrot.slane %v626_v39, 1 }
 0x17a   :  { %v811_v59 = vrot.slane %v810_v34, 1  ;;  %v848_v9 = vadd.f32 %v847_v38, %v846_v30  ;;  %v1032_v17 = vadd.f32 %v1031_v18, %v1030_v19  ;;  %v1069_v23 = vrot.slane %v1068_v13, 2 }
 0x17b   :  { %v406_v58 = vadd.f32 %v405_v29, %v404_v33  ;;  %v591_v25 = vadd.f32 %v590_v43, %v368_v2  ;;  %v628_v12 = vadd.f32 %v627_v1, %v626_v39  ;;  %v1079_v39 = vld [vmem:[%s3669_s2] sm:$0x1] }
 0x17c   :  { %v812_v51 = vadd.f32 %v811_v59, %v810_v34  ;;  %v849_v14 = vrot.slane %v848_v9, 1  ;;  %v1033_v28 = vrot.slane %v1032_v17, 1  ;;  %v1070_v8 = vadd.f32 %v1069_v23, %v1068_v13  ;;  %v1083_v29 = vld [vmem:[#allocation7] sm:$0x1] }
 0x17d   :  { %v629_v7 = vadd.f32 %v628_v12, %v406_v58  ;;  %v1087_v13 = vlaneseq }
 0x17e   :  { %v813_v24 = vadd.f32 %v812_v51, %v591_v25  ;;  %v850_v20 = vadd.f32 %v849_v14, %v848_v9  ;;  %v1034_v49 = vadd.f32 %v1033_v28, %v1032_v17  ;;  %v1071_v3 = vrot.slane %v1070_v8, 1 }
 0x17f   :  { %v1088_v9 = vshrl.u32 %v1087_v13, 7 }
 0x180   :  { %v851_v53 = vadd.f32 %v850_v20, %v629_v7  ;;  %v1035_v30 = vadd.f32 %v1034_v49, %v813_v24  ;;  %v1072_v52 = vadd.f32 %v1071_v3, %v1070_v8 }
 0x181   :  { %v3355_v43 = vsub.s32 0, %v1088_v9 }
 0x182   :  { %v1073_v35 = vadd.f32 %v1072_v52, %v851_v53  ;;  %v1074_v4 = vmul.f32 0.001953125, %v1035_v30 }
 0x184   :  { %v1075_v38 = vmul.f32 0.001953125, %v1073_v35  ;;  %v1076_v18 = vmul.f32 %v1074_v4, %v1074_v4 }
 0x186   :  { %v1077_v19 = vsub.f32 %v1075_v38, %v1076_v18 }
 0x188   :  { %v1078_v34 = vmax.f32 %v1077_v19, 0.0 }
 0x18a   :  { %v1080_v60 = vadd.f32 1e-05, %v1078_v34 }
 0x18c   :  { %2688 = vrsqrt.f32 %v1080_v60 }
 0x199   :  { %v2689_v33 = vpop.eup %2688 }
 0x19a   :  { %v1082_v59 = vmul.f32 %v2689_v33, %v1079_v39 }
 0x19c   :  { %v1084_v2 = vmul.f32 %v1082_v59, %v1074_v4  ;;  %v3358_v17 = vrot.slane %v1082_v59, %v3355_v43 }
 0x19e   :  { %v1085_v1 = vsub.f32 %v1083_v29, %v1084_v2  ;;  %v1106_v51 = vmul.f32 %v3116_v36, %v3358_v17  ;;  %v1107_v14 = vmul.f32 %v3130_v54, %v3358_v17  ;;  %v1170_v58 = vmul.f32 %v3118_v37, %v3358_v17 }
 0x19f   :  { %v1171_v25 = vmul.f32 %v3132_v57, %v3358_v17  ;;  %v1104_v36 = vmul.f32 %v3358_v17, %v3123_v47  ;;  %v1105_v54 = vmul.f32 %v3358_v17, %v3137_v61  ;;  %v1102_v37 = vmul.f32 %v3086_v15, %v3358_v17 }
 0x1a0   :  { %v3361_v23 = vrot.slane %v1085_v1, %v3355_v43  ;;  %v1103_v57 = vmul.f32 %v3102_v26, %v3358_v17  ;;  %v1168_v20 = vmul.f32 %v3358_v17, %v3125_v50  ;;  %v1169_v7 = vmul.f32 %v3358_v17, %v3139_v0 }
 0x1a1   :  { %v1166_v26 = vmul.f32 %v3088_v16, %v3358_v17  ;;  %v1167_v50 = vmul.f32 %v3104_v27, %v3358_v17  ;;  %v1100_v0 = vmul.f32 %v3358_v17, %v3095_v21  ;;  %v1101_v35 = vmul.f32 %v3358_v17, %v3108_v31 }
 0x1a2   :  { %v1128_v12 = vadd.f32 %v3361_v23, %v1106_v51  ;;  %v1129_v28 = vadd.f32 %v3361_v23, %v1107_v14  ;;  %v1186_v8 = vadd.f32 %v1170_v58, %v3361_v23  ;;  %v1187_v24 = vadd.f32 %v1171_v25, %v3361_v23 }
 0x1a3   :  { %v1126_v49 = vadd.f32 %v3361_v23, %v1104_v36  ;;  %v1127_v3 = vadd.f32 %v3361_v23, %v1105_v54  ;;  %v1184_v61 = vadd.f32 %v1168_v20, %v3361_v23  ;;  %v1185_v30 = vadd.f32 %v1169_v7, %v3361_v23 }
 0x1a4   :  { %v1144_v47 = vmax.f32 %v1128_v12, 0.0  ;;  %v1145_v53 = vmax.f32 %v1129_v28, 0.0  ;;  %v1202_v15 = vmax.f32 %v1186_v8, 0.0  ;;  %v1203_v52 = vmax.f32 %v1187_v24, 0.0 }
 0x1a5   :  { %v1124_v4 = vadd.f32 %v3361_v23, %v1102_v37  ;;  %v1125_v38 = vadd.f32 %v3361_v23, %v1103_v57  ;;  %v1142_v18 = vmax.f32 %v1126_v49, 0.0  ;;  %v1143_v19 = vmax.f32 %v1127_v3, 0.0 }
 0x1a6   :  { %v1182_v34 = vadd.f32 %v1166_v26, %v3361_v23  ;;  %v1183_v60 = vadd.f32 %v1167_v50, %v3361_v23  ;;  %v1200_v16 = vmax.f32 %v1184_v61, 0.0  ;;  %v1201_v33 = vmax.f32 %v1185_v30, 0.0 }
 0x1a7   :  { %v1211_v39 = vpack.c.bf16 %v1203_v52, %v1202_v15  ;;  %v1153_v27 = vpack.c.bf16 %v1145_v53, %v1144_v47  ;;  %v1098_v21 = vmul.f32 %v3056_v55, %v3358_v17  ;;  %v1164_v31 = vmul.f32 %v3358_v17, %v3097_v22 }
 0x1a8   :  { %v1165_v13 = vmul.f32 %v3358_v17, %v3110_v32  ;;  %v1099_v59 = vmul.f32 %v3072_v5, %v3358_v17  ;;  %v1122_v9 = vadd.f32 %v3361_v23, %v1100_v0  ;;  %v1123_v2 = vadd.f32 %v3361_v23, %v1101_v35 }
 0x1a9   :  { %2441 = vmatpush3.bf16.msra.mxu0 %v1211_v39  ;;  %2461 = vmatpush3.bf16.msra.mxu1 %v1153_v27  ;;  %v1140_v29 = vmax.f32 %v1124_v4, 0.0  ;;  %v1141_v1 = vmax.f32 %v1125_v38, 0.0  ;;  %v1180_v51 = vadd.f32 %v1164_v31, %v3361_v23  ;;  %v1198_v22 = vmax.f32 %v1182_v34, 0.0  ;;  %v3752_v39 = vld [vmem:[#allocation23_spill] sm:$0xff] }
 0x1aa   :  { %v1181_v55 = vadd.f32 %v1165_v13, %v3361_v23  ;;  %2442 = vmatprep.subr.bf16.mxu0 %v3750_v46  ;;  %2462 = vmatprep.subr.bf16.mxu1 %v3750_v46  ;;  %v1199_v32 = vmax.f32 %v1183_v60, 0.0  ;;  %v1210_v14 = vpack.c.bf16 %v1201_v33, %v1200_v16  ;;  %v1152_v5 = vpack.c.bf16 %v1143_v19, %v1142_v18  ;;  %v3751_v16 = vld [vmem:[#allocation22_spill] sm:$0xff] }
 0x1ab   :  { %v1096_v58 = vmul.f32 %v3358_v17, %v3064_v62  ;;  %v1162_v25 = vmul.f32 %v3058_v56, %v3358_v17  ;;  %v1163_v12 = vmul.f32 %v3074_v6, %v3358_v17  ;;  %v1097_v28 = vmul.f32 %v3358_v17, %v3079_v10 }
 0x1ac   :  { %v1120_v8 = vadd.f32 %v3361_v23, %v1098_v21  ;;  %v1121_v24 = vadd.f32 %v3361_v23, %v1099_v59  ;;  %v1138_v36 = vmax.f32 %v1122_v9, 0.0  ;;  %v1139_v54 = vmax.f32 %v1123_v2, 0.0 }
 0x1ad   :  { %2443 = vmatpush3.bf16.msra.mxu0 %v1210_v14  ;;  %2463 = vmatpush3.bf16.msra.mxu1 %v1152_v5  ;;  %v1178_v37 = vadd.f32 %v1162_v25, %v3361_v23  ;;  %v1179_v62 = vadd.f32 %v1163_v12, %v3361_v23  ;;  %v1196_v56 = vmax.f32 %v1180_v51, 0.0  ;;  %v1197_v6 = vmax.f32 %v1181_v55, 0.0  ;;  %v3754_v14 = vld [vmem:[#allocation50_spill] sm:$0xff]  ;;  %v3756_v12 = vld [vmem:[#allocation52_spill] sm:$0xff] }
 0x1ae   :  { %2444 = vmatprep.subr.bf16.mxu0 %v3750_v46  ;;  %2464 = vmatprep.subr.bf16.mxu1 %v3750_v46  ;;  %v1209_v57 = vpack.c.bf16 %v1199_v32, %v1198_v22  ;;  %v1151_v10 = vpack.c.bf16 %v1141_v1, %v1140_v29  ;;  %v1094_v20 = vmul.f32 %v3026_v40, %v3358_v17  ;;  %v1136_v61 = vmax.f32 %v1120_v8, 0.0  ;;  %v3753_v22 = vld [vmem:[#allocation55_spill] sm:$0xff]  ;;  %v3757_v8 = vld [vmem:[#allocation49_spill] sm:$0xff] }
 0x1af   :  { %v1160_v7 = vmul.f32 %v3358_v17, %v3066_v63  ;;  %v1161_v49 = vmul.f32 %v3358_v17, %v3081_v11  ;;  %v1095_v3 = vmul.f32 %v3034_v44, %v3358_v17  ;;  %v1118_v47 = vadd.f32 %v3361_v23, %v1096_v58  ;;  %v3755_v58 = vld [vmem:[#allocation48_spill] sm:$0xff] }
 0x1b0   :  { %v1119_v53 = vadd.f32 %v3361_v23, %v1097_v28  ;;  %v1137_v30 = vmax.f32 %v1121_v24, 0.0  ;;  %v1194_v63 = vmax.f32 %v1178_v37, 0.0  ;;  %v1195_v11 = vmax.f32 %v1179_v62, 0.0 }
 0x1b1   :  { %2445 = vmatpush3.bf16.msra.mxu0 %v1209_v57  ;;  %2465 = vmatpush3.bf16.msra.mxu1 %v1151_v10  ;;  %v1176_v15 = vadd.f32 %v1160_v7, %v3361_v23  ;;  %v1177_v40 = vadd.f32 %v1161_v49, %v3361_v23  ;;  %v1208_v52 = vpack.c.bf16 %v1197_v6, %v1196_v56  ;;  %v1134_v18 = vmax.f32 %v1118_v47, 0.0  ;;  %v3759_v47 = vld [vmem:[#allocation54_spill] sm:$0xff] }
 0x1b2   :  { %2446 = vmatprep.subr.bf16.mxu0 %v3750_v46  ;;  %2466 = vmatprep.subr.bf16.mxu1 %v3750_v46  ;;  %v1150_v44 = vpack.c.bf16 %v1139_v54, %v1138_v36  ;;  %v1092_v26 = vmul.f32 %v3358_v17, %v3030_v42  ;;  %v1158_v50 = vmul.f32 %v3028_v41, %v3358_v17  ;;  %v1135_v19 = vmax.f32 %v1119_v53, 0.0  ;;  %v3758_v36 = vld [vmem:[#allocation53_spill] sm:$0xff] }
 0x1b3   :  { %v1159_v0 = vmul.f32 %v3036_v45, %v3358_v17  ;;  %v1093_v35 = vmul.f32 %v3358_v17, %v3042_v48  ;;  %v1116_v4 = vadd.f32 %v3361_v23, %v1094_v20  ;;  %v1117_v38 = vadd.f32 %v3361_v23, %v1095_v3 }
 0x1b4   :  { %v1174_v34 = vadd.f32 %v1158_v50, %v3361_v23  ;;  %v1192_v41 = vmax.f32 %v1176_v15, 0.0  ;;  %v1193_v45 = vmax.f32 %v1177_v40, 0.0  ;;  %v1207_v60 = vpack.c.bf16 %v1195_v11, %v1194_v63  ;;  %v3761_v40 = vld [vmem:[#allocation40_spill] sm:$0xff] }
 0x1b5   :  { %2447 = vmatpush3.bf16.msra.mxu0 %v1208_v52  ;;  %2467 = vmatpush3.bf16.msra.mxu1 %v1150_v44  ;;  %v1175_v42 = vadd.f32 %v1159_v0, %v3361_v23  ;;  %v1149_v48 = vpack.c.bf16 %v1137_v30, %v1136_v61  ;;  %v1156_v33 = vmul.f32 %v3358_v17, %v3751_v16  ;;  %v1132_v13 = vmax.f32 %v1116_v4, 0.0  ;;  %v3760_v61 = vld [vmem:[#allocation51_spill] sm:$0xff] }
 0x1b6   :  { %2448 = vmatprep.subr.bf16.mxu0 %v3750_v46  ;;  %2468 = vmatprep.subr.bf16.mxu1 %v3750_v46  ;;  %v1157_v27 = vmul.f32 %v3358_v17, %v3752_v39  ;;  %v1114_v21 = vadd.f32 %v3361_v23, %v1092_v26  ;;  %v1115_v31 = vadd.f32 %v3361_v23, %v1093_v35  ;;  %v1133_v59 = vmax.f32 %v1117_v38, 0.0 }
 0x1b7   :  { %v1172_v9 = vadd.f32 %v1156_v33, %v3361_v23  ;;  %v1190_v29 = vmax.f32 %v1174_v34, 0.0  ;;  %v1191_v1 = vmax.f32 %v1175_v42, 0.0  ;;  %v1206_v51 = vpack.c.bf16 %v1193_v45, %v1192_v41  ;;  %v3763_v34 = vld [vmem:[#allocation41_spill] sm:$0xff]  ;;  %v3765_v33 = vld [vmem:[#allocation42_spill] sm:$0xff] }
 0x1b8   :  { %v1173_v2 = vadd.f32 %v1157_v27, %v3361_v23  ;;  %v1148_v55 = vpack.c.bf16 %v1135_v19, %v1134_v18  ;;  %v1426_v32 = vmul.f32 %v3358_v17, %v3753_v22  ;;  %v1319_v5 = vmul.f32 %v3358_v17, %v3754_v14  ;;  %v3762_v18 = vld [vmem:[#allocation44_spill] sm:$0xff]  ;;  %v3764_v41 = vld [vmem:[#allocation45_spill] sm:$0xff]  ;;  %v3766_v27 = vld [vmem:[#allocation46_spill] sm:$0xff] }
 0x1b9   :  { %2449 = vmatpush3.bf16.msra.mxu0 %v1207_v60  ;;  %2469 = vmatpush3.bf16.msra.mxu1 %v1149_v48  ;;  %v1321_v25 = vmul.f32 %v3755_v58, %v3358_v17  ;;  %v1322_v28 = vmul.f32 %v3756_v12, %v3358_v17  ;;  %v1427_v24 = vmul.f32 %v3757_v8, %v3358_v17  ;;  %v1130_v37 = vmax.f32 %v1114_v21, 0.0  ;;  %v2652_v60 = vld [vmem:[#allocation8 + $0x8] sm:$0xff]   ;;  %v2653_v48 = vld [vmem:[#allocation8] sm:$0xff]   ;;  %v3767_v22 = vld [vmem:[#allocation32_spill] sm:$0xff] }
 0x1ba   :  { %2450 = vmatprep.subr.bf16.mxu0 %v3750_v46  ;;  %2470 = vmatprep.subr.bf16.mxu1 %v3750_v46  ;;  %v1428_v54 = vmul.f32 %v3758_v36, %v3358_v17  ;;  %v1131_v62 = vmax.f32 %v1115_v31, 0.0  ;;  %v1188_v56 = vmax.f32 %v1172_v9, 0.0  ;;  %v1189_v6 = vmax.f32 %v1173_v2, 0.0  ;;  %v3768_v14 = vld [vmem:[#allocation43_spill] sm:$0xff]  ;;  %v3770_v12 = vld [vmem:[#allocation36_spill] sm:$0xff] }
 0x1bb   :  { %v1337_v57 = vadd.f32 %v1321_v25, %v3361_v23  ;;  %v1338_v10 = vadd.f32 %v1322_v28, %v3361_v23  ;;  %v1443_v20 = vadd.f32 %v1427_v24, %v3361_v23  ;;  %v1205_v49 = vpack.c.bf16 %v1191_v1, %v1190_v29  ;;  %v3769_v58 = vld [vmem:[#allocation47_spill] sm:$0xff] }
 0x1bc   :  { %v1444_v7 = vadd.f32 %v1428_v54, %v3361_v23  ;;  %v1147_v3 = vpack.c.bf16 %v1133_v59, %v1132_v13  ;;  %v1320_v53 = vmul.f32 %v3358_v17, %v3759_v47  ;;  %v1425_v30 = vmul.f32 %v3358_v17, %v3760_v61  ;;  %v3773_v47 = vld [vmem:[#allocation37_spill] sm:$0xff]  ;;  %v3774_v61 = vld [vmem:[#allocation38_spill] sm:$0xff] }
 0x1bd   :  { %2451 = vmatpush3.bf16.msra.mxu0 %v1206_v51  ;;  %2471 = vmatpush3.bf16.msra.mxu1 %v1148_v55  ;;  %v1442_v15 = vadd.f32 %v1426_v32, %v3361_v23  ;;  %v1317_v63 = vmul.f32 %v3761_v40, %v3358_v17  ;;  %v1335_v11 = vadd.f32 %v1319_v5, %v3361_v23  ;;  %v1353_v26 = vmax.f32 %v1337_v57, 0.0 }
 0x1be   :  { %2452 = vmatprep.subr.bf16.mxu0 %v3750_v46  ;;  %2472 = vmatprep.subr.bf16.mxu1 %v3750_v46  ;;  %v1336_v52 = vadd.f32 %v1320_v53, %v3361_v23  ;;  %v1441_v44 = vadd.f32 %v1425_v30, %v3361_v23  ;;  %v1354_v50 = vmax.f32 %v1338_v10, 0.0  ;;  %v1459_v0 = vmax.f32 %v1443_v20, 0.0  ;;  %v3771_v20 = vld [vmem:[#allocation34_spill] sm:$0xff] }
 0x1bf   :  { %v1460_v35 = vmax.f32 %v1444_v7, 0.0  ;;  %v1204_v4 = vpack.c.bf16 %v1189_v6, %v1188_v56  ;;  %v1146_v38 = vpack.c.bf16 %v1131_v62, %v1130_v37  ;;  %v1318_v19 = vmul.f32 %v3762_v18, %v3358_v17  ;;  %v3776_v18 = vld [vmem:[#allocation35_spill] sm:$0xff] }
 0x1c0   :  { %v1423_v42 = vmul.f32 %v3763_v34, %v3358_v17  ;;  %v1424_v45 = vmul.f32 %v3764_v41, %v3358_v17  ;;  %v1458_v16 = vmax.f32 %v1442_v15, 0.0  ;;  %v1315_v39 = vmul.f32 %v3358_v17, %v3765_v33  ;;  %v3777_v34 = vld [vmem:[#allocation39_spill] sm:$0xff]  ;;  %v3778_v41 = vld [vmem:[#allocation28_spill] sm:$0xff] }
 0x1c1   :  { %2453 = vmatpush3.bf16.msra.mxu0 %v1205_v49  ;;  %2473 = vmatpush3.bf16.msra.mxu1 %v1147_v3  ;;  %v1316_v21 = vmul.f32 %v3358_v17, %v3766_v27  ;;  %v1333_v31 = vadd.f32 %v1317_v63, %v3361_v23  ;;  %v1334_v13 = vadd.f32 %v1318_v19, %v3361_v23  ;;  %v1351_v2 = vmax.f32 %v1335_v11, 0.0  ;;  %v3772_v49 = vld [vmem:[#allocation33_spill] sm:$0xff] }
 0x1c2   :  { %2454 = vmatprep.subr.bf16.mxu0 %v3750_v46  ;;  %2474 = vmatprep.subr.bf16.mxu1 %v3750_v46  ;;  %v1439_v59 = vadd.f32 %v1423_v42, %v3361_v23  ;;  %v1440_v9 = vadd.f32 %v1424_v45, %v3361_v23  ;;  %v1352_v29 = vmax.f32 %v1336_v52, 0.0  ;;  %v1457_v1 = vmax.f32 %v1441_v44, 0.0 }
 0x1c3   :  { %v1362_v51 = vpack.c.bf16 %v1354_v50, %v1353_v26  ;;  %v1468_v55 = vpack.c.bf16 %v1460_v35, %v1459_v0  ;;  %v1313_v32 = vmul.f32 %v3767_v22, %v3358_v17  ;;  %v1421_v5 = vmul.f32 %v3358_v17, %v3768_v14  ;;  %v3782_v22 = vld [vmem:[#allocation30_spill] sm:$0xff] }
 0x1c4   :  { %v1422_v25 = vmul.f32 %v3358_v17, %v3769_v58  ;;  %v1314_v28 = vmul.f32 %v3770_v12, %v3358_v17  ;;  %v1331_v8 = vadd.f32 %v1315_v39, %v3361_v23  ;;  %v1332_v24 = vadd.f32 %v1316_v21, %v3361_v23 }
 0x1c5   :  { %2455 = vmatpush3.bf16.msra.mxu0 %v1204_v4  ;;  %2475 = vmatpush3.bf16.msra.mxu1 %v1146_v38  ;;  %v1437_v36 = vadd.f32 %v1421_v5, %v3361_v23  ;;  %v1349_v37 = vmax.f32 %v1333_v31, 0.0  ;;  %v1350_v62 = vmax.f32 %v1334_v13, 0.0  ;;  %v1455_v56 = vmax.f32 %v1439_v59, 0.0  ;;  %v3775_v4 = vld [vmem:[#allocation24_spill] sm:$0xff] }
 0x1c6   :  { %2480 = vmatprep.subr.bf16.mxu0 %v3750_v46  ;;  %2500 = vmatprep.subr.bf16.mxu1 %v3750_v46  ;;  %v1438_v54 = vadd.f32 %v1422_v25, %v3361_v23  ;;  %v1456_v6 = vmax.f32 %v1440_v9, 0.0  ;;  %v1361_v57 = vpack.c.bf16 %v1352_v29, %v1351_v2  ;;  %v1467_v10 = vpack.c.bf16 %v1458_v16, %v1457_v1  ;;  %v3779_v9 = vld [vmem:[#allocation26_spill] sm:$0xff]  ;;  %v3780_v29 = vld [vmem:[#allocation25_spill] sm:$0xff] }
 0x1c7   :  { %v1311_v7 = vmul.f32 %v3358_v17, %v3771_v20  ;;  %v1419_v3 = vmul.f32 %v3772_v49, %v3358_v17  ;;  %v1420_v53 = vmul.f32 %v3773_v47, %v3358_v17  ;;  %v1312_v30 = vmul.f32 %v3358_v17, %v3774_v61 }
 0x1c8   :  { %2457 = vmatmul.mubr.bf16.vlgmr.msra.gmra.mxu0 %v2652_v60  ;;  %2477 = vmatmul.mubr.bf16.vlgmr.msra.gmra.mxu1 %v2653_v48  ;;  %v1329_v15 = vadd.f32 %v1313_v32, %v3361_v23  ;;  %v1330_v40 = vadd.f32 %v1314_v28, %v3361_v23  ;;  %v1347_v52 = vmax.f32 %v1331_v8, 0.0  ;;  %v1348_v44 = vmax.f32 %v1332_v24, 0.0 }
 0x1c9   :  { %2481 = vmatpush3.bf16.msra.mxu0 %v1362_v51  ;;  %2501 = vmatpush3.bf16.msra.mxu1 %v1468_v55  ;;  %v1435_v63 = vadd.f32 %v1419_v3, %v3361_v23  ;;  %v1436_v11 = vadd.f32 %v1420_v53, %v3361_v23  ;;  %v1453_v26 = vmax.f32 %v1437_v36, 0.0  ;;  %v1454_v50 = vmax.f32 %v1438_v54, 0.0  ;;  %v3781_v51 = vld [vmem:[#allocation29_spill] sm:$0xff] }
 0x1ca   :  { %2482 = vmatprep.subr.bf16.mxu0 %v3750_v46  ;;  %2502 = vmatprep.subr.bf16.mxu1 %v3750_v46  ;;  %v1360_v0 = vpack.c.bf16 %v1350_v62, %v1349_v37  ;;  %v1466_v35 = vpack.c.bf16 %v1456_v6, %v1455_v56  ;;  %v1309_v38 = vmul.f32 %v3775_v4, %v3358_v17  ;;  %v1345_v39 = vmax.f32 %v1329_v15, 0.0  ;;  %v3783_v37 = vld [vmem:[#allocation27_spill] sm:$0xff] }
 0x1cb   :  { %2496 = vmatprep.mubr.msk.bf16.mxu0 %vm2875_vm0, %v3750_v46  ;;  %2516 = vmatprep.mubr.msk.bf16.mxu1 %vm2875_vm0, %v3750_v46  ;;  %v1417_v19 = vmul.f32 %v3358_v17, %v3776_v18  ;;  %v1418_v42 = vmul.f32 %v3358_v17, %v3777_v34  ;;  %v1310_v45 = vmul.f32 %v3778_v41, %v3358_v17  ;;  %v1346_v27 = vmax.f32 %v1330_v40, 0.0  ;;  %v3784_v56 = vld [vmem:[#allocation31_spill] sm:$0xff]  ;;  %v2660_v18 = vld [vmem:[#allocation10 + $0x18] sm:$0xff]  }
 0x1cc   :  { %v1327_v60 = vadd.f32 %v1311_v7, %v3361_v23  ;;  %v1328_v48 = vadd.f32 %v1312_v30, %v3361_v23  ;;  %v1451_v21 = vmax.f32 %v1435_v63, 0.0  ;;  %v1452_v31 = vmax.f32 %v1436_v11, 0.0  ;;  %v2658_v4 = vld [vmem:[#allocation10 + $0x28] sm:$0xff]  }
 0x1cd   :  { %2483 = vmatpush3.bf16.msra.mxu0 %v1361_v57  ;;  %2503 = vmatpush3.bf16.msra.mxu1 %v1467_v10  ;;  %v1433_v16 = vadd.f32 %v1417_v19, %v3361_v23  ;;  %v1434_v33 = vadd.f32 %v1418_v42, %v3361_v23  ;;  %v1359_v13 = vpack.c.bf16 %v1348_v44, %v1347_v52  ;;  %v2661_v19 = vld [vmem:[#allocation10 + $0x10] sm:$0xff]   ;;  %v2662_v34 = vld [vmem:[#allocation10 + $0x8] sm:$0xff]   ;;  %v2663_v42 = vld [vmem:[#allocation10] sm:$0xff]  }
 0x1ce   :  { %2484 = vmatprep.subr.bf16.mxu0 %v3750_v46  ;;  %2504 = vmatprep.subr.bf16.mxu1 %v3750_v46  ;;  %v1465_v59 = vpack.c.bf16 %v1454_v50, %v1453_v26  ;;  %v1307_v2 = vmul.f32 %v3358_v17, %v3779_v9  ;;  %v1415_v1 = vmul.f32 %v3780_v29, %v3358_v17  ;;  %v1343_v12 = vmax.f32 %v1327_v60, 0.0  ;;  %v2654_v26 = vld [vmem:[#allocation8 + $0x10] sm:$0xff]   ;;  %v2655_v50 = vld [vmem:[#allocation8 + $0x18] sm:$0xff]  }
 0x1cf   :  { %v1416_v55 = vmul.f32 %v3781_v51, %v3358_v17  ;;  %v1308_v32 = vmul.f32 %v3358_v17, %v3782_v22  ;;  %v1325_v14 = vadd.f32 %v1309_v38, %v3361_v23  ;;  %v1326_v5 = vadd.f32 %v1310_v45, %v3361_v23  ;;  %v2659_v38 = vld [vmem:[#allocation10 + $0x20] sm:$0xff]  }
 0x1d0   :  { %v1431_v58 = vadd.f32 %v1415_v1, %v3361_v23  ;;  %v1344_v28 = vmax.f32 %v1328_v48, 0.0  ;;  %v1449_v8 = vmax.f32 %v1433_v16, 0.0  ;;  %v1450_v24 = vmax.f32 %v1434_v33, 0.0 }
 0x1d1   :  { %2485 = vmatpush3.bf16.msra.mxu0 %v1360_v0  ;;  %2505 = vmatpush3.bf16.msra.mxu1 %v1466_v35  ;;  %v1432_v25 = vadd.f32 %v1416_v55, %v3361_v23  ;;  %v1358_v36 = vpack.c.bf16 %v1346_v27, %v1345_v39  ;;  %v1464_v54 = vpack.c.bf16 %v1452_v31, %v1451_v21  ;;  %v1341_v49 = vmax.f32 %v1325_v14, 0.0  ;;  %v2656_v0 = vld [vmem:[#allocation10 + $0x38] sm:$0xff]   ;;  %v2657_v35 = vld [vmem:[#allocation10 + $0x30] sm:$0xff]  }
 0x1d2   :  { %2486 = vmatprep.subr.bf16.mxu0 %v3750_v46  ;;  %2506 = vmatprep.subr.bf16.mxu1 %v3750_v46  ;;  %v1413_v62 = vmul.f32 %v3358_v17, %v3783_v37  ;;  %v1414_v6 = vmul.f32 %v3358_v17, %v3784_v56  ;;  %v1323_v57 = vadd.f32 %v1307_v2, %v3361_v23  ;;  %v1342_v3 = vmax.f32 %v1326_v5, 0.0  ;;  %v2664_v14 = vld [vmem:[#allocation11 + $0x38] sm:$0xff]   ;;  %v2665_v5 = vld [vmem:[#allocation11 + $0x30] sm:$0xff]   ;;  %v2674_v37 = vld [vmem:[#allocation10 + $0x68] sm:$0xff]  }
 0x1d3   :  { %v1324_v10 = vadd.f32 %v1308_v32, %v3361_v23  ;;  %v1447_v47 = vmax.f32 %v1431_v58, 0.0  ;;  %v1448_v53 = vmax.f32 %v1432_v25, 0.0  ;;  %v1357_v61 = vpack.c.bf16 %v1344_v28, %v1343_v12  ;;  %v2666_v58 = vld [vmem:[#allocation11 + $0x28] sm:$0xff]   ;;  %v2667_v25 = vld [vmem:[#allocation11 + $0x20] sm:$0xff]   ;;  %v2668_v12 = vld [vmem:[#allocation11 + $0x18] sm:$0xff]  }
 0x1d4   :  { %v1429_v20 = vadd.f32 %v1413_v62, %v3361_v23  ;;  %v1430_v7 = vadd.f32 %v1414_v6, %v3361_v23  ;;  %v1463_v17 = vpack.c.bf16 %v1450_v24, %v1449_v8  ;;  %v1339_v30 = vmax.f32 %v1323_v57, 0.0  ;;  %v2669_v28 = vld [vmem:[#allocation11 + $0x10] sm:$0xff]   ;;  %v2670_v8 = vld [vmem:[#allocation11 + $0x8] sm:$0xff]   ;;  %v2672_v24 = vld [vmem:[#allocation10 + $0x78] sm:$0xff]  }
 0x1d5   :  { %2487 = vmatpush3.bf16.msra.mxu0 %v1359_v13  ;;  %2507 = vmatpush3.bf16.msra.mxu1 %v1465_v59  ;;  %v1340_v15 = vmax.f32 %v1324_v10, 0.0  ;;  %v1356_v63 = vpack.c.bf16 %v1342_v3, %v1341_v49  ;;  %v1462_v11 = vpack.c.bf16 %v1448_v53, %v1447_v47  ;;  %v2675_v62 = vld [vmem:[#allocation10 + $0x60] sm:$0xff]   ;;  %v2676_v56 = vld [vmem:[#allocation10 + $0x58] sm:$0xff]   ;;  %v2677_v6 = vld [vmem:[#allocation10 + $0x50] sm:$0xff]  }
 0x1d6   :  { %2488 = vmatprep.subr.bf16.mxu0 %v3750_v46  ;;  %2508 = vmatprep.subr.bf16.mxu1 %v3750_v46  ;;  %v1445_v40 = vmax.f32 %v1429_v20, 0.0  ;;  %v1446_v23 = vmax.f32 %v1430_v7, 0.0  ;;  %v2678_v57 = vld [vmem:[#allocation10 + $0x48] sm:$0xff]   ;;  %v2136_v10 = vld [vmem:[%s3673_s6] ss:$0 sm:$0xff] }
 0x1d7   :  { %v1355_v52 = vpack.c.bf16 %v1340_v15, %v1339_v30 }
 0x1d8   :  { %v1461_v44 = vpack.c.bf16 %v1446_v23, %v1445_v40 }
 0x1d9   :  { %2489 = vmatpush3.bf16.msra.mxu0 %v1358_v36  ;;  %2509 = vmatpush3.bf16.msra.mxu1 %v1464_v54  ;;  %v2671_v36 = vld [vmem:[#allocation11] sm:$0xff]   ;;  %v2673_v54 = vld [vmem:[#allocation10 + $0x70] sm:$0xff]  }
 0x1da   :  { %2490 = vmatprep.subr.bf16.mxu0 %v3750_v46  ;;  %2510 = vmatprep.subr.bf16.mxu1 %v3750_v46 }
 0x1dd   :  { %2491 = vmatpush3.bf16.msra.mxu0 %v1357_v61  ;;  %2511 = vmatpush3.bf16.msra.mxu1 %v1463_v17 }
 0x1de   :  { %2492 = vmatprep.subr.bf16.mxu0 %v3750_v46  ;;  %2512 = vmatprep.subr.bf16.mxu1 %v3750_v46 }
 0x1e1   :  { %2493 = vmatpush3.bf16.msra.mxu0 %v1356_v63  ;;  %2513 = vmatpush3.bf16.msra.mxu1 %v1462_v11 }
 0x1e2   :  { %2494 = vmatprep.subr.bf16.mxu0 %v3750_v46  ;;  %2514 = vmatprep.subr.bf16.mxu1 %v3750_v46 }
 0x1e5   :  { %2495 = vmatpush3.bf16.msra.mxu0 %v1355_v52  ;;  %2515 = vmatpush3.bf16.msra.mxu1 %v1461_v44 }
 0x1e6   :  { %2520 = vmatprep.subr.bf16.mxu0 %v3750_v46  ;;  %2540 = vmatprep.subr.bf16.mxu1 %v3750_v46 }
 0x1e8   :  { %2497 = vmatmul.mubr.bf16.vlgmr.msra.gmra.mxu0 %v2654_v26  ;;  %2517 = vmatmul.mubr.bf16.vlgmr.msra.gmra.mxu1 %v2655_v50 }
 0x1e9   :  { %2536 = vmatprep.mubr.msk.bf16.mxu0 %vm2875_vm0, %v3750_v46  ;;  %2556 = vmatprep.mubr.msk.bf16.mxu1 %vm2875_vm0, %v3750_v46 }
 0x1ea   :  { %2521 = vmatpush3.bf16.msra.mxu0 %v2656_v0  ;;  %2541 = vmatpush3.bf16.msra.mxu1 %v2664_v14  ;;  %v2680_v14 = vld [vmem:[#allocation11 + $0x78] sm:$0xff]  }
 0x1eb   :  { %2522 = vmatprep.subr.bf16.mxu0 %v3750_v46  ;;  %2542 = vmatprep.subr.bf16.mxu1 %v3750_v46 }
 0x1ee   :  { %2523 = vmatpush3.bf16.msra.mxu0 %v2657_v35  ;;  %2543 = vmatpush3.bf16.msra.mxu1 %v2665_v5  ;;  %v2681_v5 = vld [vmem:[#allocation11 + $0x70] sm:$0xff]  }
 0x1ef   :  { %2524 = vmatprep.subr.bf16.mxu0 %v3750_v46  ;;  %2544 = vmatprep.subr.bf16.mxu1 %v3750_v46 }
 0x1f2   :  { %2525 = vmatpush3.bf16.msra.mxu0 %v2658_v4  ;;  %2545 = vmatpush3.bf16.msra.mxu1 %v2666_v58  ;;  %v2682_v58 = vld [vmem:[#allocation11 + $0x68] sm:$0xff]  }
 0x1f3   :  { %2526 = vmatprep.subr.bf16.mxu0 %v3750_v46  ;;  %2546 = vmatprep.subr.bf16.mxu1 %v3750_v46 }
 0x1f6   :  { %2527 = vmatpush3.bf16.msra.mxu0 %v2659_v38  ;;  %2547 = vmatpush3.bf16.msra.mxu1 %v2667_v25  ;;  %v2683_v25 = vld [vmem:[#allocation11 + $0x60] sm:$0xff]  }
 0x1f7   :  { %2528 = vmatprep.subr.bf16.mxu0 %v3750_v46  ;;  %2548 = vmatprep.subr.bf16.mxu1 %v3750_v46 }
 0x1fa   :  { %2529 = vmatpush3.bf16.msra.mxu0 %v2660_v18  ;;  %2549 = vmatpush3.bf16.msra.mxu1 %v2668_v12  ;;  %v2684_v12 = vld [vmem:[#allocation11 + $0x58] sm:$0xff]  }
 0x1fb   :  { %2530 = vmatprep.subr.bf16.mxu0 %v3750_v46  ;;  %2550 = vmatprep.subr.bf16.mxu1 %v3750_v46 }
 0x1fe   :  { %2531 = vmatpush3.bf16.msra.mxu0 %v2661_v19  ;;  %2551 = vmatpush3.bf16.msra.mxu1 %v2669_v28  ;;  %v2685_v28 = vld [vmem:[#allocation11 + $0x50] sm:$0xff]  }
 0x1ff   :  { %2532 = vmatprep.subr.bf16.mxu0 %v3750_v46  ;;  %2552 = vmatprep.subr.bf16.mxu1 %v3750_v46 }
 0x202   :  { %2533 = vmatpush3.bf16.msra.mxu0 %v2662_v34  ;;  %2553 = vmatpush3.bf16.msra.mxu1 %v2670_v8  ;;  %v2686_v8 = vld [vmem:[#allocation11 + $0x48] sm:$0xff]  }
 0x203   :  { %2534 = vmatprep.subr.bf16.mxu0 %v3750_v46  ;;  %2554 = vmatprep.subr.bf16.mxu1 %v3750_v46 }
 0x206   :  { %2535 = vmatpush3.bf16.msra.mxu0 %v2663_v42  ;;  %2555 = vmatpush3.bf16.msra.mxu1 %v2671_v36  ;;  %v2155_v36 = vld [vmem:[%s3673_s6 + $0x1] ss:$0 sm:$0xff] }
 0x207   :  { %2560 = vmatprep.subr.bf16.mxu0 %v3750_v46  ;;  %2580 = vmatprep.subr.bf16.mxu1 %v3750_v46 }
 0x288   :  { %v1255_v41 = vpop.f32.mrf.mxu0  ;;  %v1301_v45 = vpop.f32.mrf.mxu1 }
 0x289   :  { %v1302_v21 = vadd.f32 %v1301_v45, %v1255_v41  ;;  %v1652_v41 = vld [vmem:[%s3674_s7] sm:$0x1] }
 0x28a   :  { %v2458_v60 = vpop.f32.mrf.mxu0  ;;  %v2478_v48 = vpop.f32.mrf.mxu1 }
 0x28b   :  { %v1656_v48 = vld [vmem:[%s3675_s8] sm:$0x1] }
 0x28c   :  { %v1258_v16 = vpop.f32.mrf.mxu0  ;;  %v1304_v33 = vpop.f32.mrf.mxu1 }
 0x28e   :  { %v2459_v39 = vpop.f32.mrf.mxu0  ;;  %v2479_v27 = vpop.f32.mrf.mxu1 }
 0x2a8   :  { %v1406_v31 = vpop.f32.mrf.mxu0  ;;  %v1512_v13 = vpop.f32.mrf.mxu1 }
 0x2a9   :  { %v1412_v59 = vadd.f32 %v1406_v31, %v1302_v21 }
 0x2aa   :  { %v2498_v9 = vpop.f32.mrf.mxu0  ;;  %v2518_v2 = vpop.f32.mrf.mxu1 }
 0x2ab   :  { %v1518_v29 = vadd.f32 %v1512_v13, %v1412_v59  ;;  %v2679_v9 = vld [vmem:[#allocation10 + $0x40] sm:$0xff]   ;;  %v2145_v2 = vld [vmem:[%s3677_s10] ss:$0 sm:$0xff] }
 0x2ac   :  { %v1409_v1 = vpop.f32.mrf.mxu0  ;;  %v1515_v51 = vpop.f32.mrf.mxu1 }
 0x2ad   :  { %v1519_v55 = vpack.c.bf16 %v1518_v29, %v1518_v29 }
 0x2ae   :  { %v2499_v22 = vpop.f32.mrf.mxu0  ;;  %v2519_v32 = vpop.f32.mrf.mxu1 }
 0x2af   :  { %2537 = vmatmul.mubr.bf16.vlgmr.msra.gmra.mxu0 %v1519_v55 }
 0x2b0   :  { %2576 = vmatprep.mubr.msk.bf16.mxu0 %vm2875_vm0, %v3750_v46  ;;  %2561 = vmatpush3.bf16.msra.mxu0 %v2672_v24  ;;  %v2687_v24 = vld [vmem:[#allocation11 + $0x40] sm:$0xff]  }
 0x2b1   :  { %2562 = vmatprep.subr.bf16.mxu0 %v3750_v46 }
 0x2b4   :  { %2563 = vmatpush3.bf16.msra.mxu0 %v2673_v54 }
 0x2b5   :  { %2564 = vmatprep.subr.bf16.mxu0 %v3750_v46 }
 0x2b8   :  { %2565 = vmatpush3.bf16.msra.mxu0 %v2674_v37 }
 0x2b9   :  { %2566 = vmatprep.subr.bf16.mxu0 %v3750_v46 }
 0x2bc   :  { %2567 = vmatpush3.bf16.msra.mxu0 %v2675_v62 }
 0x2bd   :  { %2568 = vmatprep.subr.bf16.mxu0 %v3750_v46 }
 0x2c0   :  { %2569 = vmatpush3.bf16.msra.mxu0 %v2676_v56 }
 0x2c1   :  { %2570 = vmatprep.subr.bf16.mxu0 %v3750_v46 }
 0x2c4   :  { %2571 = vmatpush3.bf16.msra.mxu0 %v2677_v6 }
 0x2c5   :  { %2572 = vmatprep.subr.bf16.mxu0 %v3750_v46 }
 0x2c8   :  { %2573 = vmatpush3.bf16.msra.mxu0 %v2678_v57 }
 0x2c9   :  { %2574 = vmatprep.subr.bf16.mxu0 %v3750_v46 }
 0x2cc   :  { %2575 = vmatpush3.bf16.msra.mxu0 %v2679_v9 }
 0x36f   :  { %v1625_v20 = vpop.f32.mrf.mxu0 }
 0x370   :  { %v1626_v7 = vadd.f32 %v2136_v10, %v1625_v20 }
 0x371   :  { %v2538_v49 = vpop.f32.mrf.mxu0 }
 0x372   :  { %v1632_v3 = vsel %vm1631_vm1, %v1626_v7, 0.0  ;;  %v1640_v47 = vmul.f32 %v1626_v7, %v1626_v7 }
 0x373   :  { %v1633_v53 = vrot.slane %v1632_v3, 4  ;;  %v1628_v61 = vpop.f32.mrf.mxu0 }
 0x374   :  { %v1641_v17 = vsel %vm1631_vm1, %v1640_v47, 0.0 }
 0x375   :  { %v1634_v30 = vadd.f32 %v1633_v53, %v1632_v3  ;;  %v1642_v15 = vrot.slane %v1641_v17, 4  ;;  %v2539_v40 = vpop.f32.mrf.mxu0 }
 0x377   :  { %v1635_v23 = vrot.slane %v1634_v30, 2  ;;  %v1643_v63 = vadd.f32 %v1642_v15, %v1641_v17 }
 0x379   :  { %v1636_v11 = vadd.f32 %v1635_v23, %v1634_v30  ;;  %v1644_v52 = vrot.slane %v1643_v63, 2 }
 0x37b   :  { %v1637_v44 = vrot.slane %v1636_v11, 1  ;;  %v1645_v26 = vadd.f32 %v1644_v52, %v1643_v63 }
 0x37d   :  { %v1638_v50 = vadd.f32 %v1637_v44, %v1636_v11  ;;  %v1646_v0 = vrot.slane %v1645_v26, 1 }
 0x37f   :  { %v1639_v35 = vmul.f32 0.5, %v1638_v50  ;;  %v1647_v4 = vadd.f32 %v1646_v0, %v1645_v26  ;;  %v2164_v0 = vld [vmem:[%s3674_s7 + $0x1] sm:$0x1]  ;;  %s2814_s7 = scalar_lea.vmem %s2067_s25, 32 }
 0x380   :  { %p2815_p2 = scmp.ne.s32.totalorder %s2067_s25, %s2814_s7  ;;  %p2820_p4 = scmp.lt.s32.totalorder %s2814_s7, %s2814_s7 }
 0x381   :  { %v1648_v38 = vmul.f32 0.5, %v1647_v4  ;;  %v1649_v18 = vmul.f32 %v1639_v35, %v1639_v35 }
 0x382   :  { %p2821_p5 = por %p2820_p4, %p2819_p3 }
 0x383   :  { %v1650_v19 = vsub.f32 %v1648_v38, %v1649_v18  ;;  %v2165_v38 = vld [vmem:[%s3675_s8 + $0x1] sm:$0x1] }
 0x384   :  { %p2822_p6 = pnand %p2821_p5, %p2815_p2 }
 0x385   :  { %v1651_v34 = vmax.f32 %v1650_v19, 0.0 }
 0x387   :  { %v1653_v42 = vadd.f32 1e-05, %v1651_v34 }
 0x389   :  { %2690 = vrsqrt.f32 %v1653_v42 }
 0x396   :  { %v2691_v45 = vpop.eup %2690 }
 0x397   :  { %v1655_v60 = vmul.f32 %v2691_v45, %v1652_v41 }
 0x399   :  { %v1657_v16 = vmul.f32 %v1655_v60, %v1639_v35  ;;  %v1663_v33 = vrot.slane %v1655_v60, %v3355_v43 }
 0x39b   :  { %v1658_v39 = vsub.f32 %v1656_v48, %v1657_v16  ;;  %v1665_v27 = vmul.f32 %v1663_v33, %v1626_v7 }
 0x39d   :  { %v1670_v21 = vrot.slane %v1658_v39, %v3355_v43 }
 0x39f   :  { %v1672_v31 = vadd.f32 %v1670_v21, %v1665_v27 }
 0x3a1   :  { %v1673_v13 = vmax.f32 %v1672_v31, 0.0 }
 0x3a3   :  { %v1674_v59 = vpack.c.bf16 %v1673_v13, %v1673_v13 }
 0x3a5   :  { %2557 = vmatmul.mubr.bf16.vlgmr.msra.gmra.mxu1 %v1674_v59 }
 0x3a6   :  { %2596 = vmatprep.mubr.msk.bf16.mxu1 %vm2875_vm0, %v3750_v46  ;;  %2581 = vmatpush3.bf16.msra.mxu1 %v2680_v14 }
 0x3a7   :  { %2582 = vmatprep.subr.bf16.mxu1 %v3750_v46 }
 0x3aa   :  { %2583 = vmatpush3.bf16.msra.mxu1 %v2681_v5 }
 0x3ab   :  { %2584 = vmatprep.subr.bf16.mxu1 %v3750_v46 }
 0x3ae   :  { %2585 = vmatpush3.bf16.msra.mxu1 %v2682_v58 }
 0x3af   :  { %2586 = vmatprep.subr.bf16.mxu1 %v3750_v46 }
 0x3b2   :  { %2587 = vmatpush3.bf16.msra.mxu1 %v2683_v25 }
 0x3b3   :  { %2588 = vmatprep.subr.bf16.mxu1 %v3750_v46 }
 0x3b6   :  { %2589 = vmatpush3.bf16.msra.mxu1 %v2684_v12 }
 0x3b7   :  { %2590 = vmatprep.subr.bf16.mxu1 %v3750_v46 }
 0x3ba   :  { %2591 = vmatpush3.bf16.msra.mxu1 %v2685_v28 }
 0x3bb   :  { %2592 = vmatprep.subr.bf16.mxu1 %v3750_v46 }
 0x3be   :  { %2593 = vmatpush3.bf16.msra.mxu1 %v2686_v8 }
 0x3bf   :  { %2594 = vmatprep.subr.bf16.mxu1 %v3750_v46 }
 0x3c2   :  { %2595 = vmatpush3.bf16.msra.mxu1 %v2687_v24 }
 0x465   :  { %v1780_v29 = vpop.f32.mrf.mxu1 }
 0x466   :  { %v1781_v1 = vadd.f32 %v2145_v2, %v1780_v29 }
 0x467   :  { %v2558_v51 = vpop.f32.mrf.mxu1 }
 0x468   :  { %v1787_v55 = vpack.c.bf16 %v1781_v1, %v1781_v1  ;;  %1786 = vst [vmem:[#allocation13] sm:$0x3] %v1781_v1 }
 0x469   :  { %v1783_v22 = vpop.f32.mrf.mxu1 }
 0x46a   :  { %2577 = vmatmul.mubr.bf16.vlgmr.msra.gmra.mxu0 %v1787_v55 }
 0x46b   :  { %v2559_v32 = vpop.f32.mrf.mxu1 }
 0x52a   :  { %v1895_v54 = vpop.f32.mrf.mxu0 }
 0x52b   :  { %v1896_v37 = vadd.f32 %v2155_v36, %v1895_v54 }
 0x52c   :  { %v2578_v62 = vpop.f32.mrf.mxu0 }
 0x52d   :  { %v1901_v56 = vsel %vm1631_vm1, %v1896_v37, 0.0  ;;  %v1909_v6 = vmul.f32 %v1896_v37, %v1896_v37 }
 0x52e   :  { %v1902_v57 = vrot.slane %v1901_v56, 4  ;;  %v1898_v10 = vpop.f32.mrf.mxu0 }
 0x52f   :  { %v1910_v20 = vsel %vm1631_vm1, %v1909_v6, 0.0 }
 0x530   :  { %v1903_v7 = vadd.f32 %v1902_v57, %v1901_v56  ;;  %v1911_v49 = vrot.slane %v1910_v20, 4  ;;  %v2579_v3 = vpop.f32.mrf.mxu0 }
 0x532   :  { %v1904_v47 = vrot.slane %v1903_v7, 2  ;;  %v1912_v46 = vadd.f32 %v1911_v49, %v1910_v20 }
 0x534   :  { %v1905_v53 = vadd.f32 %v1904_v47, %v1903_v7  ;;  %v1913_v61 = vrot.slane %v1912_v46, 2 }
 0x536   :  { %v1906_v17 = vrot.slane %v1905_v53, 1  ;;  %v1914_v30 = vadd.f32 %v1913_v61, %v1912_v46 }
 0x538   :  { %v1907_v15 = vadd.f32 %v1906_v17, %v1905_v53  ;;  %v1915_v40 = vrot.slane %v1914_v30, 1 }
 0x53a   :  { %v1908_v23 = vmul.f32 0.5, %v1907_v15  ;;  %v1916_v63 = vadd.f32 %v1915_v40, %v1914_v30 }
 0x53c   :  { %v1917_v11 = vmul.f32 0.5, %v1916_v63  ;;  %v1918_v52 = vmul.f32 %v1908_v23, %v1908_v23 }
 0x53e   :  { %v1919_v44 = vsub.f32 %v1917_v11, %v1918_v52 }
 0x540   :  { %v1920_v26 = vmax.f32 %v1919_v44, 0.0 }
 0x542   :  { %v1923_v50 = vadd.f32 1e-05, %v1920_v26 }
 0x544   :  { %2692 = vrsqrt.f32 %v1923_v50 }
 0x551   :  { %v2693_v35 = vpop.eup %2692 }
 0x552   :  { %v1925_v4 = vmul.f32 %v2693_v35, %v2164_v0 }
 0x554   :  { %v1928_v18 = vmul.f32 %v1925_v4, %v1908_v23  ;;  %v1934_v19 = vrot.slane %v1925_v4, %v3355_v43 }
 0x556   :  { %v1929_v34 = vsub.f32 %v2165_v38, %v1928_v18  ;;  %v1936_v42 = vmul.f32 %v1934_v19, %v1896_v37 }
 0x558   :  { %v1941_v41 = vrot.slane %v1929_v34, %v3355_v43 }
 0x55a   :  { %v1943_v45 = vadd.f32 %v1941_v41, %v1936_v42 }
 0x55c   :  { %v1944_v60 = vmax.f32 %v1943_v45, 0.0 }
 0x55e   :  { %v1945_v48 = vpack.c.bf16 %v1944_v60, %v1944_v60 }
 0x560   :  { %2597 = vmatmul.mubr.bf16.vlgmr.msra.gmra.mxu1 %v1945_v48 }
 0x561   :  { %2825 = shalt.err (!%p2822_p6)
}
 0x562   :  { %2069 = dma.vmem_to_hbm [thread:$0]  %s2067_s25, 32, %s3678_s11, [#allocation4]   ;;  %v2167_v43 = vld [vmem:[%s3677_s10 + $0x1] ss:$0 sm:$0xff] }
 0x563   :  { %s2877_s0 = smov [#allocation14]  }
 0x564   :  { %s2076_s13 = sshll.u32 %s2877_s0, 4  ;;  %s2077_s13 = int_to_ptr.vmem [resolvable:$true] %s2076_s13 }
 0x565   :  { %s2834_s3 = scalar_lea.vmem %s2077_s13, 32  ;;  %p2839_p8 = scmp.lt.s32.totalorder %s2077_s13, %s2077_s13 }
 0x566   :  { %p2835_p7 = scmp.ne.s32.totalorder %s2077_s13, %s2834_s3  ;;  %p2840_p9 = scmp.lt.s32.totalorder %s2834_s3, %s2834_s3 }
 0x568   :  { %p2841_p10 = por %p2840_p9, %p2839_p8 }
 0x56a   :  { %p2842_p11 = pnand %p2841_p10, %p2835_p7 }
 0x620   :  { %v2053_v16 = vpop.f32.mrf.mxu1 }
 0x621   :  { %v2054_v33 = vadd.f32 %v2167_v43, %v2053_v16 }
 0x622   :  { %v2598_v39 = vpop.f32.mrf.mxu1 }
 0x623   :  { %2059 = vst [vmem:[#allocation14] sm:$0x3] %v2054_v33 }
 0x624   :  { %v2056_v27 = vpop.f32.mrf.mxu1 }
 0x625   :  { %2845 = shalt.err (!%p2842_p11)
}
 0x626   :  { %2079 = dma.vmem_to_hbm [thread:$0]  %s2077_s13, 32, %s3679_s12, [#allocation15]   ;;  %v2599_v21 = vpop.f32.mrf.mxu1 }
 0x627   :  { %2862 = dma.done.wait [#allocation4], 32  }
 0x628   :  { %2863 = vsyncadd [#allocation4], 4294967264 }
 0x629   :  { %2864 = dma.done.wait [#allocation15], 32  }
 0x62a   :  { %2865 = vsyncadd [#allocation15], 4294967264 }
 0x62b   :  { %2086 = vsyncpa [#allocation3], 1 }
 0x62c   :  { %2087 = vsyncpa [#allocation6], 1 }
 0x62d   :  { %2088 = vsyncpa [#allocation9], 1 }
 0x62e   :  { %2089 = vsyncpa [#allocation12], 1 }
 0x62f   :  { %2090 = vsyncpa [#allocation4], 1 }
 0x630   :  { %2091 = vsyncpa [#allocation15], 1 }

</bundles_post_ra>
